<compile_context>
chip_gen: v7x
topology: tpu7x:2x2x1
jax: 0.10.0
libtpu: 0.0.40
codegen_flags: <defaults>
</compile_context>

<pallas_src>
import jax
import jax.numpy as jnp
from jax import random
from jax.experimental import pallas as pl
from jax.experimental.pallas import tpu as pltpu


# ----------------------------------------------------------------------------
# Fused kernel: gate projection -> bidirectional recurrence -> FC head
# ----------------------------------------------------------------------------
def _row_encoder_kernel(x_ref, wx_ref, bx_ref, whh_ref, wfc_ref, bfc_ref,
                        out_ref, gx_ref, h_ref):
    """Everything stays in VMEM; one kernel invocation does the whole forward.

    Packed gate-column layout (8H = 256 lanes, gate-major / direction-minor):
        [i_f i_b f_f f_b g_f g_b o_f o_b], each block H lanes wide.
    h / c carry layout: (N, 2H) with forward in lanes [0:H), backward [H:2H).
    """
    L, N, G = gx_ref.shape            # G = 8*H (both directions, interleaved)
    H2 = whh_ref.shape[0]             # 2*H
    H = H2 // 2

    # ---- 1) Gate pre-activations for all timesteps & both directions -------
    # One (L*N, D) @ (D, 8H) MXU pass, biases folded.  Parked in VMEM scratch
    # so it does not occupy vregs across the unrolled time loop.
    xb = x_ref[...].astype(jnp.bfloat16)
    gx = jnp.dot(xb, wx_ref[...], preferred_element_type=jnp.float32) + bx_ref[...]
    gx_ref[...] = gx.reshape(L, N, G)

    # ---- hoisted constants (built once, reused every step) -----------------
    lane = jax.lax.broadcasted_iota(jnp.int32, (N, G), 1)
    fwd_mask = (lane % (2 * H)) < H                  # forward-direction lanes
    g_mask = (lane >= 4 * H) & (lane < 6 * H)        # 'g' gate lanes (tanh)
    whh = whh_ref[...]                               # resident (2H, 8H) bf16

    h = jnp.zeros((N, H2), jnp.float32)              # [h_fwd | h_bwd]
    c = jnp.zeros((N, H2), jnp.float32)

    # ---- 2) Bidirectional recurrence ----------------------------------------
    # Fully unrolled static loop: step s advances the forward direction at
    # time s and the backward direction at time L-1-s, both carried in the
    # same (N, 2H) vreg-resident h/c tiles.  One MXU push per step via the
    # block-diagonal recurrent weight.
    for s in range(L):
        # per-direction x-gate contributions come from different time indices
        gx_step = jnp.where(fwd_mask, gx_ref[s], gx_ref[L - 1 - s])   # (N, 8H)
        gates = gx_step + jnp.dot(h.astype(jnp.bfloat16), whh,
                                  preferred_element_type=jnp.float32)
        # sigmoid(z) = 0.5*(tanh(0.5*z)+1): a single full-width tanh covers
        # all 8 gate blocks; per-lane select picks tanh vs sigmoid behaviour.
        z = jnp.where(g_mask, gates, 0.5 * gates)
        t = jnp.tanh(z)
        act = jnp.where(g_mask, t, 0.5 * t + 0.5)
        i_g = act[:, 0 * H2:1 * H2]        # (N, 2H)  [fwd | bwd]
        f_g = act[:, 1 * H2:2 * H2]
        g_g = act[:, 2 * H2:3 * H2]
        o_g = act[:, 3 * H2:4 * H2]
        c = f_g * c + i_g * g_g
        h = o_g * jnp.tanh(c)
        # fwd hidden belongs to time s, bwd hidden to time L-1-s; they land in
        # adjacent lane halves of one scratch, so the FC needs no concat copy.
        h_ref[s, :, :H] = h[:, :H]
        h_ref[L - 1 - s, :, H:] = h[:, H:]

    # ---- 3) FC head:  y = cat(h_f, h_b) @ fc_w^T + fc_b ---------------------
    hcat = h_ref[...].reshape(L * N, H2)
    y = jnp.dot(hcat.astype(jnp.bfloat16), wfc_ref[...],
                preferred_element_type=jnp.float32) + bfc_ref[...]
    out_ref[...] = y


# ----------------------------------------------------------------------------
# Wrapper
# ----------------------------------------------------------------------------
def row_encoder_forward(packed, x):
    """x: (B, K, L, D) float32 -> (B, K, L, H) float32."""
    B, K, L, D = x.shape
    G = packed["wx"].shape[1]            # 8H
    H = G // 8
    Hout = packed["wfc"].shape[1]
    N = B * K

    # view(B*K, L, D) then time-major so each recurrence step reads one
    # contiguous (N, 8H) gate tile; the transposes are tiny (16 KiB) XLA ops.
    xs = jnp.transpose(x.reshape(N, L, D).astype(jnp.float32), (1, 0, 2))
    xs = xs.reshape(L * N, D)

    y = pl.pallas_call(
        _row_encoder_kernel,
        out_shape=jax.ShapeDtypeStruct((L * N, Hout), jnp.float32),
        grid_spec=pltpu.PrefetchScalarGridSpec(
            num_scalar_prefetch=0,
            grid=(1,),                                    # whole problem fits VMEM
            in_specs=[
                pl.BlockSpec((L * N, D), lambda i: (0, 0)),      # x, time-major
                pl.BlockSpec((D, G), lambda i: (0, 0)),          # W_ih (both dirs)
                pl.BlockSpec((1, G), lambda i: (0, 0)),          # folded gate biases
                pl.BlockSpec((2 * H, G), lambda i: (0, 0)),      # W_hh block-diagonal
                pl.BlockSpec((2 * H, Hout), lambda i: (0, 0)),   # fc weight
                pl.BlockSpec((1, Hout), lambda i: (0, 0)),       # fc bias
            ],
            out_specs=pl.BlockSpec((L * N, Hout), lambda i: (0, 0)),
            scratch_shapes=[
                pltpu.VMEM((L, N, G), jnp.float32),      # gate pre-activations
                pltpu.VMEM((L, N, 2 * H), jnp.float32),  # [h_fwd | h_bwd] stream
            ],
        ),
        compiler_params=pltpu.CompilerParams(
            dimension_semantics=("arbitrary",)),
    )(xs, packed["wx"], packed["bx"], packed["whh"], packed["wfc"], packed["bfc"])

    # (L, N, H) time-major -> (B, K, L, H)
    return jnp.transpose(y.reshape(L, N, Hout), (1, 0, 2)).reshape(B, K, L, Hout)


# ----------------------------------------------------------------------------
# Parameters (PyTorch layout) + one-time packing for the kernel
# ----------------------------------------------------------------------------
def make_params(key, num_features, hidden):
    """PyTorch-style LSTM/Linear parameters (uniform(-1/sqrt(H), 1/sqrt(H)))."""
    bound = float(1.0 / (hidden ** 0.5))

    def u(k, shape):
        return random.uniform(k, shape, jnp.float32, -bound, bound)

    ks = random.split(key, 10)
    return {
        "w_ih_f": u(ks[0], (4 * hidden, num_features)),
        "w_hh_f": u(ks[1], (4 * hidden, hidden)),
        "b_ih_f": u(ks[2], (4 * hidden,)),
        "b_hh_f": u(ks[3], (4 * hidden,)),
        "w_ih_b": u(ks[4], (4 * hidden, num_features)),
        "w_hh_b": u(ks[5], (4 * hidden, hidden)),
        "b_ih_b": u(ks[6], (4 * hidden,)),
        "b_hh_b": u(ks[7], (4 * hidden,)),
        "fc_w":   u(ks[8], (hidden, 2 * hidden)),
        "fc_b":   u(ks[9], (hidden,)),
    }


def pack_params(p):
    """Pre-pack / pre-cast weights ONCE (outside the jitted path).

    Gate columns are interleaved gate-major / direction-minor:
        [i_f i_b f_f f_b g_f g_b o_f o_b]   (each block H lanes)
    so the kernel can select per-direction x-contributions with one lane mask
    and slice each gate as a contiguous (N, 2H) tile.
    """
    H = p["w_hh_f"].shape[1]

    def interleave(wf, wb):
        # wf/wb: (rows, 4H) per-direction gate blocks [i f g o] -> (rows, 8H)
        rows = wf.shape[0]
        return jnp.stack([wf.reshape(rows, 4, H),
                          wb.reshape(rows, 4, H)], axis=2).reshape(rows, 8 * H)

    zeros = jnp.zeros((H, 4 * H), jnp.float32)
    wx = interleave(p["w_ih_f"].T, p["w_ih_b"].T)                        # (D, 8H)
    bx = interleave((p["b_ih_f"] + p["b_hh_f"])[None, :],
                    (p["b_ih_b"] + p["b_hh_b"])[None, :])                # (1, 8H)
    # block-diagonal recurrent weight: rows 0:H act on h_fwd, rows H:2H on h_bwd
    whh = interleave(jnp.concatenate([p["w_hh_f"].T, zeros], axis=0),
                     jnp.concatenate([zeros, p["w_hh_b"].T], axis=0))    # (2H, 8H)
    return {
        "wx":  jnp.asarray(wx, jnp.bfloat16),
        "bx":  jnp.asarray(bx, jnp.float32),
        "whh": jnp.asarray(whh, jnp.bfloat16),
        "wfc": jnp.asarray(p["fc_w"].T, jnp.bfloat16),                   # (2H, H)
        "bfc": p["fc_b"].reshape(1, -1).astype(jnp.float32),
    }


# ----------------------------------------------------------------------------
# Pure-JAX reference (f32, PyTorch semantics) for validation
# ----------------------------------------------------------------------------
def row_encoder_reference(params, x):
    B, K, L, D = x.shape
    H = params["w_hh_f"].shape[1]
    N = B * K
    xs = x.reshape(N, L, D).astype(jnp.float32)

    def run_dir(seq, w_ih, w_hh, b_ih, b_hh):
        def step(carry, x_t):
            h, c = carry
            gates = x_t @ w_ih.T + h @ w_hh.T + b_ih + b_hh
            i, f, g, o = jnp.split(gates, 4, axis=-1)
            i = jax.nn.sigmoid(i)
            f = jax.nn.sigmoid(f)
            g = jnp.tanh(g)
            o = jax.nn.sigmoid(o)
            c = f * c + i * g
            h = o * jnp.tanh(c)
            return (h, c), h

        init = (jnp.zeros((N, H), jnp.float32), jnp.zeros((N, H), jnp.float32))
        _, hs = jax.lax.scan(step, init, jnp.swapaxes(seq, 0, 1))
        return jnp.swapaxes(hs, 0, 1)                                   # (N, L, H)

    hf = run_dir(xs, params["w_ih_f"], params["w_hh_f"],
                 params["b_ih_f"], params["b_hh_f"])
    hb = run_dir(xs[:, ::-1, :], params["w_ih_b"], params["w_hh_b"],
                 params["b_ih_b"], params["b_hh_b"])[:, ::-1, :]
    out = jnp.concatenate([hf, hb], axis=-1) @ params["fc_w"].T + params["fc_b"]
    return out.reshape(B, K, L, H)


# ----------------------------------------------------------------------------

if __name__ == "__main__":
    B, K, L = 2, 4, 16              # batch, rows, row length
    num_features, hidden = 32, 32   # D, H  (8H = 256 -> lane-dense gate tiles)

    key = random.PRNGKey(0)
    kp, kx = random.split(key)
    params = make_params(kp, num_features, hidden)
    packed = pack_params(params)
    x = random.normal(kx, (B, K, L, num_features), jnp.float32)

    fwd = jax.jit(row_encoder_forward)
    out = jax.block_until_ready(fwd(packed, x))

    assert out.shape == (B, K, L, hidden), out.shape
    assert out.dtype == jnp.float32
    assert bool(jnp.all(jnp.isfinite(out)))

    # Validate against a pure-JAX f32 reference (kernel uses bf16 MXU operands,
    # so allow a small tolerance).
    ref = row_encoder_reference(params, x)
    max_err = float(jnp.max(jnp.abs(out - ref)))
    assert max_err < 5e-2, f"max abs err vs reference: {max_err}"

    print("KERNEL_OK")
</pallas_src>

<mosaic_0001>
module attributes {stable_mosaic.version = 11 : i64} {
  func.func @_row_encoder_kernel(%arg0: i32, %arg1: memref<128x32xf32, #tpu.memory_space<vmem>>, %arg2: memref<32x256xbf16, #tpu.memory_space<vmem>>, %arg3: memref<1x256xf32, #tpu.memory_space<vmem>>, %arg4: memref<64x256xbf16, #tpu.memory_space<vmem>>, %arg5: memref<64x32xbf16, #tpu.memory_space<vmem>>, %arg6: memref<1x32xf32, #tpu.memory_space<vmem>>, %arg7: memref<128x32xf32, #tpu.memory_space<vmem>>, %arg8: memref<16x8x256xf32, #tpu.memory_space<vmem>>, %arg9: memref<16x8x64xf32, #tpu.memory_space<vmem>>) attributes {dimension_semantics = [#tpu.dimension_semantics<arbitrary>], iteration_bounds = array<i64: 1>, scalar_prefetch = 0 : i64, scratch_operands = 2 : i64, tpu.core_type = #tpu.core_type<tc>, window_params = [{pipeline_mode = #tpu.pipeline_mode<synchronous>, transform_indices = @transform_0, window_bounds = array<i64: 128, 32>}, {pipeline_mode = #tpu.pipeline_mode<synchronous>, transform_indices = @transform_1, window_bounds = array<i64: 32, 256>}, {pipeline_mode = #tpu.pipeline_mode<synchronous>, transform_indices = @transform_2, window_bounds = array<i64: 1, 256>}, {pipeline_mode = #tpu.pipeline_mode<synchronous>, transform_indices = @transform_3, window_bounds = array<i64: 64, 256>}, {pipeline_mode = #tpu.pipeline_mode<synchronous>, transform_indices = @transform_4, window_bounds = array<i64: 64, 32>}, {pipeline_mode = #tpu.pipeline_mode<synchronous>, transform_indices = @transform_5, window_bounds = array<i64: 1, 32>}, {pipeline_mode = #tpu.pipeline_mode<synchronous>, transform_indices = @transform_6, window_bounds = array<i64: 128, 32>}]} {
    %c0 = arith.constant 0 : index
    %c0_0 = arith.constant 0 : index
    %0 = vector.load %arg1[%c0, %c0_0] : memref<128x32xf32, #tpu.memory_space<vmem>>, vector<128x32xf32>
    %1 = arith.truncf %0 : vector<128x32xf32> to vector<128x32xbf16>
    %c0_1 = arith.constant 0 : index
    %c0_2 = arith.constant 0 : index
    %2 = vector.load %arg2[%c0_1, %c0_2] : memref<32x256xbf16, #tpu.memory_space<vmem>>, vector<32x256xbf16>
    %cst = arith.constant dense<0.000000e+00> : vector<128x256xf32>
    %3 = tpu.matmul %1, %2, %cst {dimension_numbers = #tpu.dot_dimension_numbers<[1], [0], [0], [1], [0, 0, 1, 1], [], []>} : vector<128x32xbf16>, vector<32x256xbf16>, vector<128x256xf32> -> vector<128x256xf32>
    %c0_3 = arith.constant 0 : index
    %c0_4 = arith.constant 0 : index
    %4 = vector.load %arg3[%c0_3, %c0_4] : memref<1x256xf32, #tpu.memory_space<vmem>>, vector<1x256xf32>
    %5 = vector.broadcast %4 : vector<1x256xf32> to vector<128x256xf32>
    %6 = arith.addf %3, %5 : vector<128x256xf32>
    %7 = vector.shape_cast %6 : vector<128x256xf32> to vector<16x8x256xf32>
    %c0_5 = arith.constant 0 : index
    %c0_6 = arith.constant 0 : index
    %c0_7 = arith.constant 0 : index
    %8 = vector.load %arg8[%c0_5, %c0_6, %c0_7] : memref<16x8x256xf32, #tpu.memory_space<vmem>>, vector<16x8x256xf32>
    tpu.vector_store %arg8[%c0_5, %c0_6, %c0_7], %7 {strides = array<i32>} : memref<16x8x256xf32, #tpu.memory_space<vmem>>, vector<16x8x256xf32>,
    %9 = tpu.iota {dimensions = array<i32: 1>} : vector<8x256xi32>
    %c64_i32 = arith.constant 64 : i32
    %c0_i32 = arith.constant 0 : i32
    %10 = arith.cmpi eq, %c64_i32, %c0_i32 : i32
    %c1_i32 = arith.constant 1 : i32
    %11 = arith.select %10, %c1_i32, %c64_i32 : i32
    %12 = vector.broadcast %11 : i32 to vector<8x256xi32>
    %13 = arith.remsi %9, %12 : vector<8x256xi32>
    %c0_i32_8 = arith.constant 0 : i32
    %14 = vector.broadcast %c0_i32_8 : i32 to vector<8x256xi32>
    %15 = arith.cmpi ne, %13, %14 : vector<8x256xi32>
    %c0_i32_9 = arith.constant 0 : i32
    %16 = vector.broadcast %c0_i32_9 : i32 to vector<8x256xi32>
    %17 = arith.cmpi slt, %13, %16 : vector<8x256xi32>
    %c0_i32_10 = arith.constant 0 : i32
    %18 = arith.cmpi slt, %11, %c0_i32_10 : i32
    %19 = vector.broadcast %18 : i1 to vector<8x256xi1>
    %20 = vector.broadcast %19 : vector<8x256xi1> to vector<8x256xi1>
    %21 = arith.xori %17, %20 : vector<8x256xi1>
    %22 = arith.andi %21, %15 : vector<8x256xi1>
    %23 = vector.broadcast %11 : i32 to vector<8x256xi32>
    %24 = arith.addi %13, %23 : vector<8x256xi32>
    %25 = arith.select %22, %24, %13 : vector<8x256xi1>, vector<8x256xi32>
    %c32_i32 = arith.constant 32 : i32
    %26 = vector.broadcast %c32_i32 : i32 to vector<8x256xi32>
    %27 = arith.cmpi slt, %25, %26 : vector<8x256xi32>
    %c128_i32 = arith.constant 128 : i32
    %28 = vector.broadcast %c128_i32 : i32 to vector<8x256xi32>
    %29 = arith.cmpi sge, %9, %28 : vector<8x256xi32>
    %c192_i32 = arith.constant 192 : i32
    %30 = vector.broadcast %c192_i32 : i32 to vector<8x256xi32>
    %31 = arith.cmpi slt, %9, %30 : vector<8x256xi32>
    %32 = arith.andi %29, %31 : vector<8x256xi1>
    %c0_11 = arith.constant 0 : index
    %c0_12 = arith.constant 0 : index
    %33 = vector.load %arg4[%c0_11, %c0_12] : memref<64x256xbf16, #tpu.memory_space<vmem>>, vector<64x256xbf16>
    %cst_13 = arith.constant 0.000000e+00 : f32
    %34 = vector.broadcast %cst_13 : f32 to vector<8x64xf32>
    %cst_14 = arith.constant 0.000000e+00 : f32
    %35 = vector.broadcast %cst_14 : f32 to vector<8x64xf32>
    %c0_15 = arith.constant 0 : index
    %c0_16 = arith.constant 0 : index
    %c0_17 = arith.constant 0 : index
    %36 = vector.load %arg8[%c0_15, %c0_16, %c0_17] : memref<16x8x256xf32, #tpu.memory_space<vmem>>, vector<1x8x256xf32>
    %37 = vector.shape_cast %36 : vector<1x8x256xf32> to vector<8x256xf32>
    %c15 = arith.constant 15 : index
    %c0_18 = arith.constant 0 : index
    %c0_19 = arith.constant 0 : index
    %38 = vector.load %arg8[%c15, %c0_18, %c0_19] : memref<16x8x256xf32, #tpu.memory_space<vmem>>, vector<1x8x256xf32>
    %39 = vector.shape_cast %38 : vector<1x8x256xf32> to vector<8x256xf32>
    %40 = arith.select %27, %37, %39 : vector<8x256xi1>, vector<8x256xf32>
    %41 = arith.truncf %34 : vector<8x64xf32> to vector<8x64xbf16>
    %cst_20 = arith.constant dense<0.000000e+00> : vector<8x256xf32>
    %42 = tpu.matmul %41, %33, %cst_20 {dimension_numbers = #tpu.dot_dimension_numbers<[1], [0], [0], [1], [0, 0, 1, 1], [], []>} : vector<8x64xbf16>, vector<64x256xbf16>, vector<8x256xf32> -> vector<8x256xf32>
    %43 = arith.addf %40, %42 : vector<8x256xf32>
    %cst_21 = arith.constant 5.000000e-01 : f32
    %44 = vector.broadcast %cst_21 : f32 to vector<8x256xf32>
    %45 = arith.mulf %44, %43 : vector<8x256xf32>
    %46 = arith.select %32, %43, %45 : vector<8x256xi1>, vector<8x256xf32>
    %47 = math.tanh %46 : vector<8x256xf32>
    %cst_22 = arith.constant 5.000000e-01 : f32
    %48 = vector.broadcast %cst_22 : f32 to vector<8x256xf32>
    %49 = arith.mulf %48, %47 : vector<8x256xf32>
    %cst_23 = arith.constant 5.000000e-01 : f32
    %50 = vector.broadcast %cst_23 : f32 to vector<8x256xf32>
    %51 = arith.addf %49, %50 : vector<8x256xf32>
    %52 = arith.select %32, %47, %51 : vector<8x256xi1>, vector<8x256xf32>
    %53 = vector.extract_strided_slice %52 {offsets = [0, 0], sizes = [8, 64], strides = [1, 1]} : vector<8x256xf32> to vector<8x64xf32>
    %54 = vector.extract_strided_slice %52 {offsets = [0, 64], sizes = [8, 64], strides = [1, 1]} : vector<8x256xf32> to vector<8x64xf32>
    %55 = vector.extract_strided_slice %52 {offsets = [0, 128], sizes = [8, 64], strides = [1, 1]} : vector<8x256xf32> to vector<8x64xf32>
    %56 = vector.extract_strided_slice %52 {offsets = [0, 192], sizes = [8, 64], strides = [1, 1]} : vector<8x256xf32> to vector<8x64xf32>
    %57 = arith.mulf %54, %35 : vector<8x64xf32>
    %58 = arith.mulf %53, %55 : vector<8x64xf32>
    %59 = arith.addf %57, %58 : vector<8x64xf32>
    %60 = math.tanh %59 : vector<8x64xf32>
    %61 = arith.mulf %56, %60 : vector<8x64xf32>
    %62 = vector.extract_strided_slice %61 {offsets = [0, 0], sizes = [8, 32], strides = [1, 1]} : vector<8x64xf32> to vector<8x32xf32>
    %c0_24 = arith.constant 0 : index
    %c0_25 = arith.constant 0 : index
    %c0_26 = arith.constant 0 : index
    %63 = vector.load %arg9[%c0_24, %c0_25, %c0_26] : memref<16x8x64xf32, #tpu.memory_space<vmem>>, vector<1x8x32xf32>
    %64 = vector.shape_cast %63 : vector<1x8x32xf32> to vector<8x32xf32>
    %65 = vector.shape_cast %62 : vector<8x32xf32> to vector<1x8x32xf32>
    tpu.vector_store %arg9[%c0_24, %c0_25, %c0_26], %65 {strides = array<i32>} : memref<16x8x64xf32, #tpu.memory_space<vmem>>, vector<1x8x32xf32>,
    %66 = vector.extract_strided_slice %61 {offsets = [0, 32], sizes = [8, 32], strides = [1, 1]} : vector<8x64xf32> to vector<8x32xf32>
    %c15_27 = arith.constant 15 : index
    %c0_28 = arith.constant 0 : index
    %c32 = arith.constant 32 : index
    %67 = vector.load %arg9[%c15_27, %c0_28, %c32] : memref<16x8x64xf32, #tpu.memory_space<vmem>>, vector<1x8x32xf32>
    %68 = vector.shape_cast %67 : vector<1x8x32xf32> to vector<8x32xf32>
    %69 = vector.shape_cast %66 : vector<8x32xf32> to vector<1x8x32xf32>
    tpu.vector_store %arg9[%c15_27, %c0_28, %c32], %69 {strides = array<i32>} : memref<16x8x64xf32, #tpu.memory_space<vmem>>, vector<1x8x32xf32>,
    %c1 = arith.constant 1 : index
    %c0_29 = arith.constant 0 : index
    %c0_30 = arith.constant 0 : index
    %70 = vector.load %arg8[%c1, %c0_29, %c0_30] : memref<16x8x256xf32, #tpu.memory_space<vmem>>, vector<1x8x256xf32>
    %71 = vector.shape_cast %70 : vector<1x8x256xf32> to vector<8x256xf32>
    %c14 = arith.constant 14 : index
    %c0_31 = arith.constant 0 : index
    %c0_32 = arith.constant 0 : index
    %72 = vector.load %arg8[%c14, %c0_31, %c0_32] : memref<16x8x256xf32, #tpu.memory_space<vmem>>, vector<1x8x256xf32>
    %73 = vector.shape_cast %72 : vector<1x8x256xf32> to vector<8x256xf32>
    %74 = arith.select %27, %71, %73 : vector<8x256xi1>, vector<8x256xf32>
    %75 = arith.truncf %61 : vector<8x64xf32> to vector<8x64xbf16>
    %cst_33 = arith.constant dense<0.000000e+00> : vector<8x256xf32>
    %76 = tpu.matmul %75, %33, %cst_33 {dimension_numbers = #tpu.dot_dimension_numbers<[1], [0], [0], [1], [0, 0, 1, 1], [], []>} : vector<8x64xbf16>, vector<64x256xbf16>, vector<8x256xf32> -> vector<8x256xf32>
    %77 = arith.addf %74, %76 : vector<8x256xf32>
    %cst_34 = arith.constant 5.000000e-01 : f32
    %78 = vector.broadcast %cst_34 : f32 to vector<8x256xf32>
    %79 = arith.mulf %78, %77 : vector<8x256xf32>
    %80 = arith.select %32, %77, %79 : vector<8x256xi1>, vector<8x256xf32>
    %81 = math.tanh %80 : vector<8x256xf32>
    %cst_35 = arith.constant 5.000000e-01 : f32
    %82 = vector.broadcast %cst_35 : f32 to vector<8x256xf32>
    %83 = arith.mulf %82, %81 : vector<8x256xf32>
    %cst_36 = arith.constant 5.000000e-01 : f32
    %84 = vector.broadcast %cst_36 : f32 to vector<8x256xf32>
    %85 = arith.addf %83, %84 : vector<8x256xf32>
    %86 = arith.select %32, %81, %85 : vector<8x256xi1>, vector<8x256xf32>
    %87 = vector.extract_strided_slice %86 {offsets = [0, 0], sizes = [8, 64], strides = [1, 1]} : vector<8x256xf32> to vector<8x64xf32>
    %88 = vector.extract_strided_slice %86 {offsets = [0, 64], sizes = [8, 64], strides = [1, 1]} : vector<8x256xf32> to vector<8x64xf32>
    %89 = vector.extract_strided_slice %86 {offsets = [0, 128], sizes = [8, 64], strides = [1, 1]} : vector<8x256xf32> to vector<8x64xf32>
    %90 = vector.extract_strided_slice %86 {offsets = [0, 192], sizes = [8, 64], strides = [1, 1]} : vector<8x256xf32> to vector<8x64xf32>
    %91 = arith.mulf %88, %59 : vector<8x64xf32>
    %92 = arith.mulf %87, %89 : vector<8x64xf32>
    %93 = arith.addf %91, %92 : vector<8x64xf32>
    %94 = math.tanh %93 : vector<8x64xf32>
    %95 = arith.mulf %90, %94 : vector<8x64xf32>
    %96 = vector.extract_strided_slice %95 {offsets = [0, 0], sizes = [8, 32], strides = [1, 1]} : vector<8x64xf32> to vector<8x32xf32>
    %c1_37 = arith.constant 1 : index
    %c0_38 = arith.constant 0 : index
    %c0_39 = arith.constant 0 : index
    %97 = vector.load %arg9[%c1_37, %c0_38, %c0_39] : memref<16x8x64xf32, #tpu.memory_space<vmem>>, vector<1x8x32xf32>
    %98 = vector.shape_cast %97 : vector<1x8x32xf32> to vector<8x32xf32>
    %99 = vector.shape_cast %96 : vector<8x32xf32> to vector<1x8x32xf32>
    tpu.vector_store %arg9[%c1_37, %c0_38, %c0_39], %99 {strides = array<i32>} : memref<16x8x64xf32, #tpu.memory_space<vmem>>, vector<1x8x32xf32>,
    %100 = vector.extract_strided_slice %95 {offsets = [0, 32], sizes = [8, 32], strides = [1, 1]} : vector<8x64xf32> to vector<8x32xf32>
    %c14_40 = arith.constant 14 : index
    %c0_41 = arith.constant 0 : index
    %c32_42 = arith.constant 32 : index
    %101 = vector.load %arg9[%c14_40, %c0_41, %c32_42] : memref<16x8x64xf32, #tpu.memory_space<vmem>>, vector<1x8x32xf32>
    %102 = vector.shape_cast %101 : vector<1x8x32xf32> to vector<8x32xf32>
    %103 = vector.shape_cast %100 : vector<8x32xf32> to vector<1x8x32xf32>
    tpu.vector_store %arg9[%c14_40, %c0_41, %c32_42], %103 {strides = array<i32>} : memref<16x8x64xf32, #tpu.memory_space<vmem>>, vector<1x8x32xf32>,
    %c2 = arith.constant 2 : index
    %c0_43 = arith.constant 0 : index
    %c0_44 = arith.constant 0 : index
    %104 = vector.load %arg8[%c2, %c0_43, %c0_44] : memref<16x8x256xf32, #tpu.memory_space<vmem>>, vector<1x8x256xf32>
    %105 = vector.shape_cast %104 : vector<1x8x256xf32> to vector<8x256xf32>
    %c13 = arith.constant 13 : index
    %c0_45 = arith.constant 0 : index
    %c0_46 = arith.constant 0 : index
    %106 = vector.load %arg8[%c13, %c0_45, %c0_46] : memref<16x8x256xf32, #tpu.memory_space<vmem>>, vector<1x8x256xf32>
    %107 = vector.shape_cast %106 : vector<1x8x256xf32> to vector<8x256xf32>
    %108 = arith.select %27, %105, %107 : vector<8x256xi1>, vector<8x256xf32>
    %109 = arith.truncf %95 : vector<8x64xf32> to vector<8x64xbf16>
    %cst_47 = arith.constant dense<0.000000e+00> : vector<8x256xf32>
    %110 = tpu.matmul %109, %33, %cst_47 {dimension_numbers = #tpu.dot_dimension_numbers<[1], [0], [0], [1], [0, 0, 1, 1], [], []>} : vector<8x64xbf16>, vector<64x256xbf16>, vector<8x256xf32> -> vector<8x256xf32>
    %111 = arith.addf %108, %110 : vector<8x256xf32>
    %cst_48 = arith.constant 5.000000e-01 : f32
    %112 = vector.broadcast %cst_48 : f32 to vector<8x256xf32>
    %113 = arith.mulf %112, %111 : vector<8x256xf32>
    %114 = arith.select %32, %111, %113 : vector<8x256xi1>, vector<8x256xf32>
    %115 = math.tanh %114 : vector<8x256xf32>
    %cst_49 = arith.constant 5.000000e-01 : f32
    %116 = vector.broadcast %cst_49 : f32 to vector<8x256xf32>
    %117 = arith.mulf %116, %115 : vector<8x256xf32>
    %cst_50 = arith.constant 5.000000e-01 : f32
    %118 = vector.broadcast %cst_50 : f32 to vector<8x256xf32>
    %119 = arith.addf %117, %118 : vector<8x256xf32>
    %120 = arith.select %32, %115, %119 : vector<8x256xi1>, vector<8x256xf32>
    %121 = vector.extract_strided_slice %120 {offsets = [0, 0], sizes = [8, 64], strides = [1, 1]} : vector<8x256xf32> to vector<8x64xf32>
    %122 = vector.extract_strided_slice %120 {offsets = [0, 64], sizes = [8, 64], strides = [1, 1]} : vector<8x256xf32> to vector<8x64xf32>
    %123 = vector.extract_strided_slice %120 {offsets = [0, 128], sizes = [8, 64], strides = [1, 1]} : vector<8x256xf32> to vector<8x64xf32>
    %124 = vector.extract_strided_slice %120 {offsets = [0, 192], sizes = [8, 64], strides = [1, 1]} : vector<8x256xf32> to vector<8x64xf32>
    %125 = arith.mulf %122, %93 : vector<8x64xf32>
    %126 = arith.mulf %121, %123 : vector<8x64xf32>
    %127 = arith.addf %125, %126 : vector<8x64xf32>
    %128 = math.tanh %127 : vector<8x64xf32>
    %129 = arith.mulf %124, %128 : vector<8x64xf32>
    %130 = vector.extract_strided_slice %129 {offsets = [0, 0], sizes = [8, 32], strides = [1, 1]} : vector<8x64xf32> to vector<8x32xf32>
    %c2_51 = arith.constant 2 : index
    %c0_52 = arith.constant 0 : index
    %c0_53 = arith.constant 0 : index
    %131 = vector.load %arg9[%c2_51, %c0_52, %c0_53] : memref<16x8x64xf32, #tpu.memory_space<vmem>>, vector<1x8x32xf32>
    %132 = vector.shape_cast %131 : vector<1x8x32xf32> to vector<8x32xf32>
    %133 = vector.shape_cast %130 : vector<8x32xf32> to vector<1x8x32xf32>
    tpu.vector_store %arg9[%c2_51, %c0_52, %c0_53], %133 {strides = array<i32>} : memref<16x8x64xf32, #tpu.memory_space<vmem>>, vector<1x8x32xf32>,
    %134 = vector.extract_strided_slice %129 {offsets = [0, 32], sizes = [8, 32], strides = [1, 1]} : vector<8x64xf32> to vector<8x32xf32>
    %c13_54 = arith.constant 13 : index
    %c0_55 = arith.constant 0 : index
    %c32_56 = arith.constant 32 : index
    %135 = vector.load %arg9[%c13_54, %c0_55, %c32_56] : memref<16x8x64xf32, #tpu.memory_space<vmem>>, vector<1x8x32xf32>
    %136 = vector.shape_cast %135 : vector<1x8x32xf32> to vector<8x32xf32>
    %137 = vector.shape_cast %134 : vector<8x32xf32> to vector<1x8x32xf32>
    tpu.vector_store %arg9[%c13_54, %c0_55, %c32_56], %137 {strides = array<i32>} : memref<16x8x64xf32, #tpu.memory_space<vmem>>, vector<1x8x32xf32>,
    %c3 = arith.constant 3 : index
    %c0_57 = arith.constant 0 : index
    %c0_58 = arith.constant 0 : index
    %138 = vector.load %arg8[%c3, %c0_57, %c0_58] : memref<16x8x256xf32, #tpu.memory_space<vmem>>, vector<1x8x256xf32>
    %139 = vector.shape_cast %138 : vector<1x8x256xf32> to vector<8x256xf32>
    %c12 = arith.constant 12 : index
    %c0_59 = arith.constant 0 : index
    %c0_60 = arith.constant 0 : index
    %140 = vector.load %arg8[%c12, %c0_59, %c0_60] : memref<16x8x256xf32, #tpu.memory_space<vmem>>, vector<1x8x256xf32>
    %141 = vector.shape_cast %140 : vector<1x8x256xf32> to vector<8x256xf32>
    %142 = arith.select %27, %139, %141 : vector<8x256xi1>, vector<8x256xf32>
    %143 = arith.truncf %129 : vector<8x64xf32> to vector<8x64xbf16>
    %cst_61 = arith.constant dense<0.000000e+00> : vector<8x256xf32>
    %144 = tpu.matmul %143, %33, %cst_61 {dimension_numbers = #tpu.dot_dimension_numbers<[1], [0], [0], [1], [0, 0, 1, 1], [], []>} : vector<8x64xbf16>, vector<64x256xbf16>, vector<8x256xf32> -> vector<8x256xf32>
    %145 = arith.addf %142, %144 : vector<8x256xf32>
    %cst_62 = arith.constant 5.000000e-01 : f32
    %146 = vector.broadcast %cst_62 : f32 to vector<8x256xf32>
    %147 = arith.mulf %146, %145 : vector<8x256xf32>
    %148 = arith.select %32, %145, %147 : vector<8x256xi1>, vector<8x256xf32>
    %149 = math.tanh %148 : vector<8x256xf32>
    %cst_63 = arith.constant 5.000000e-01 : f32
    %150 = vector.broadcast %cst_63 : f32 to vector<8x256xf32>
    %151 = arith.mulf %150, %149 : vector<8x256xf32>
    %cst_64 = arith.constant 5.000000e-01 : f32
    %152 = vector.broadcast %cst_64 : f32 to vector<8x256xf32>
    %153 = arith.addf %151, %152 : vector<8x256xf32>
    %154 = arith.select %32, %149, %153 : vector<8x256xi1>, vector<8x256xf32>
    %155 = vector.extract_strided_slice %154 {offsets = [0, 0], sizes = [8, 64], strides = [1, 1]} : vector<8x256xf32> to vector<8x64xf32>
    %156 = vector.extract_strided_slice %154 {offsets = [0, 64], sizes = [8, 64], strides = [1, 1]} : vector<8x256xf32> to vector<8x64xf32>
    %157 = vector.extract_strided_slice %154 {offsets = [0, 128], sizes = [8, 64], strides = [1, 1]} : vector<8x256xf32> to vector<8x64xf32>
    %158 = vector.extract_strided_slice %154 {offsets = [0, 192], sizes = [8, 64], strides = [1, 1]} : vector<8x256xf32> to vector<8x64xf32>
    %159 = arith.mulf %156, %127 : vector<8x64xf32>
    %160 = arith.mulf %155, %157 : vector<8x64xf32>
    %161 = arith.addf %159, %160 : vector<8x64xf32>
    %162 = math.tanh %161 : vector<8x64xf32>
    %163 = arith.mulf %158, %162 : vector<8x64xf32>
    %164 = vector.extract_strided_slice %163 {offsets = [0, 0], sizes = [8, 32], strides = [1, 1]} : vector<8x64xf32> to vector<8x32xf32>
    %c3_65 = arith.constant 3 : index
    %c0_66 = arith.constant 0 : index
    %c0_67 = arith.constant 0 : index
    %165 = vector.load %arg9[%c3_65, %c0_66, %c0_67] : memref<16x8x64xf32, #tpu.memory_space<vmem>>, vector<1x8x32xf32>
    %166 = vector.shape_cast %165 : vector<1x8x32xf32> to vector<8x32xf32>
    %167 = vector.shape_cast %164 : vector<8x32xf32> to vector<1x8x32xf32>
    tpu.vector_store %arg9[%c3_65, %c0_66, %c0_67], %167 {strides = array<i32>} : memref<16x8x64xf32, #tpu.memory_space<vmem>>, vector<1x8x32xf32>,
    %168 = vector.extract_strided_slice %163 {offsets = [0, 32], sizes = [8, 32], strides = [1, 1]} : vector<8x64xf32> to vector<8x32xf32>
    %c12_68 = arith.constant 12 : index
    %c0_69 = arith.constant 0 : index
    %c32_70 = arith.constant 32 : index
    %169 = vector.load %arg9[%c12_68, %c0_69, %c32_70] : memref<16x8x64xf32, #tpu.memory_space<vmem>>, vector<1x8x32xf32>
    %170 = vector.shape_cast %169 : vector<1x8x32xf32> to vector<8x32xf32>
    %171 = vector.shape_cast %168 : vector<8x32xf32> to vector<1x8x32xf32>
    tpu.vector_store %arg9[%c12_68, %c0_69, %c32_70], %171 {strides = array<i32>} : memref<16x8x64xf32, #tpu.memory_space<vmem>>, vector<1x8x32xf32>,
    %c4 = arith.constant 4 : index
    %c0_71 = arith.constant 0 : index
    %c0_72 = arith.constant 0 : index
    %172 = vector.load %arg8[%c4, %c0_71, %c0_72] : memref<16x8x256xf32, #tpu.memory_space<vmem>>, vector<1x8x256xf32>
    %173 = vector.shape_cast %172 : vector<1x8x256xf32> to vector<8x256xf32>
    %c11 = arith.constant 11 : index
    %c0_73 = arith.constant 0 : index
    %c0_74 = arith.constant 0 : index
    %174 = vector.load %arg8[%c11, %c0_73, %c0_74] : memref<16x8x256xf32, #tpu.memory_space<vmem>>, vector<1x8x256xf32>
    %175 = vector.shape_cast %174 : vector<1x8x256xf32> to vector<8x256xf32>
    %176 = arith.select %27, %173, %175 : vector<8x256xi1>, vector<8x256xf32>
    %177 = arith.truncf %163 : vector<8x64xf32> to vector<8x64xbf16>
    %cst_75 = arith.constant dense<0.000000e+00> : vector<8x256xf32>
    %178 = tpu.matmul %177, %33, %cst_75 {dimension_numbers = #tpu.dot_dimension_numbers<[1], [0], [0], [1], [0, 0, 1, 1], [], []>} : vector<8x64xbf16>, vector<64x256xbf16>, vector<8x256xf32> -> vector<8x256xf32>
    %179 = arith.addf %176, %178 : vector<8x256xf32>
    %cst_76 = arith.constant 5.000000e-01 : f32
    %180 = vector.broadcast %cst_76 : f32 to vector<8x256xf32>
    %181 = arith.mulf %180, %179 : vector<8x256xf32>
    %182 = arith.select %32, %179, %181 : vector<8x256xi1>, vector<8x256xf32>
    %183 = math.tanh %182 : vector<8x256xf32>
    %cst_77 = arith.constant 5.000000e-01 : f32
    %184 = vector.broadcast %cst_77 : f32 to vector<8x256xf32>
    %185 = arith.mulf %184, %183 : vector<8x256xf32>
    %cst_78 = arith.constant 5.000000e-01 : f32
    %186 = vector.broadcast %cst_78 : f32 to vector<8x256xf32>
    %187 = arith.addf %185, %186 : vector<8x256xf32>
    %188 = arith.select %32, %183, %187 : vector<8x256xi1>, vector<8x256xf32>
    %189 = vector.extract_strided_slice %188 {offsets = [0, 0], sizes = [8, 64], strides = [1, 1]} : vector<8x256xf32> to vector<8x64xf32>
    %190 = vector.extract_strided_slice %188 {offsets = [0, 64], sizes = [8, 64], strides = [1, 1]} : vector<8x256xf32> to vector<8x64xf32>
    %191 = vector.extract_strided_slice %188 {offsets = [0, 128], sizes = [8, 64], strides = [1, 1]} : vector<8x256xf32> to vector<8x64xf32>
    %192 = vector.extract_strided_slice %188 {offsets = [0, 192], sizes = [8, 64], strides = [1, 1]} : vector<8x256xf32> to vector<8x64xf32>
    %193 = arith.mulf %190, %161 : vector<8x64xf32>
    %194 = arith.mulf %189, %191 : vector<8x64xf32>
    %195 = arith.addf %193, %194 : vector<8x64xf32>
    %196 = math.tanh %195 : vector<8x64xf32>
    %197 = arith.mulf %192, %196 : vector<8x64xf32>
    %198 = vector.extract_strided_slice %197 {offsets = [0, 0], sizes = [8, 32], strides = [1, 1]} : vector<8x64xf32> to vector<8x32xf32>
    %c4_79 = arith.constant 4 : index
    %c0_80 = arith.constant 0 : index
    %c0_81 = arith.constant 0 : index
    %199 = vector.load %arg9[%c4_79, %c0_80, %c0_81] : memref<16x8x64xf32, #tpu.memory_space<vmem>>, vector<1x8x32xf32>
    %200 = vector.shape_cast %199 : vector<1x8x32xf32> to vector<8x32xf32>
    %201 = vector.shape_cast %198 : vector<8x32xf32> to vector<1x8x32xf32>
    tpu.vector_store %arg9[%c4_79, %c0_80, %c0_81], %201 {strides = array<i32>} : memref<16x8x64xf32, #tpu.memory_space<vmem>>, vector<1x8x32xf32>,
    %202 = vector.extract_strided_slice %197 {offsets = [0, 32], sizes = [8, 32], strides = [1, 1]} : vector<8x64xf32> to vector<8x32xf32>
    %c11_82 = arith.constant 11 : index
    %c0_83 = arith.constant 0 : index
    %c32_84 = arith.constant 32 : index
    %203 = vector.load %arg9[%c11_82, %c0_83, %c32_84] : memref<16x8x64xf32, #tpu.memory_space<vmem>>, vector<1x8x32xf32>
    %204 = vector.shape_cast %203 : vector<1x8x32xf32> to vector<8x32xf32>
    %205 = vector.shape_cast %202 : vector<8x32xf32> to vector<1x8x32xf32>
    tpu.vector_store %arg9[%c11_82, %c0_83, %c32_84], %205 {strides = array<i32>} : memref<16x8x64xf32, #tpu.memory_space<vmem>>, vector<1x8x32xf32>,
    %c5 = arith.constant 5 : index
    %c0_85 = arith.constant 0 : index
    %c0_86 = arith.constant 0 : index
    %206 = vector.load %arg8[%c5, %c0_85, %c0_86] : memref<16x8x256xf32, #tpu.memory_space<vmem>>, vector<1x8x256xf32>
    %207 = vector.shape_cast %206 : vector<1x8x256xf32> to vector<8x256xf32>
    %c10 = arith.constant 10 : index
    %c0_87 = arith.constant 0 : index
    %c0_88 = arith.constant 0 : index
    %208 = vector.load %arg8[%c10, %c0_87, %c0_88] : memref<16x8x256xf32, #tpu.memory_space<vmem>>, vector<1x8x256xf32>
    %209 = vector.shape_cast %208 : vector<1x8x256xf32> to vector<8x256xf32>
    %210 = arith.select %27, %207, %209 : vector<8x256xi1>, vector<8x256xf32>
    %211 = arith.truncf %197 : vector<8x64xf32> to vector<8x64xbf16>
    %cst_89 = arith.constant dense<0.000000e+00> : vector<8x256xf32>
    %212 = tpu.matmul %211, %33, %cst_89 {dimension_numbers = #tpu.dot_dimension_numbers<[1], [0], [0], [1], [0, 0, 1, 1], [], []>} : vector<8x64xbf16>, vector<64x256xbf16>, vector<8x256xf32> -> vector<8x256xf32>
    %213 = arith.addf %210, %212 : vector<8x256xf32>
    %cst_90 = arith.constant 5.000000e-01 : f32
    %214 = vector.broadcast %cst_90 : f32 to vector<8x256xf32>
    %215 = arith.mulf %214, %213 : vector<8x256xf32>
    %216 = arith.select %32, %213, %215 : vector<8x256xi1>, vector<8x256xf32>
    %217 = math.tanh %216 : vector<8x256xf32>
    %cst_91 = arith.constant 5.000000e-01 : f32
    %218 = vector.broadcast %cst_91 : f32 to vector<8x256xf32>
    %219 = arith.mulf %218, %217 : vector<8x256xf32>
    %cst_92 = arith.constant 5.000000e-01 : f32
    %220 = vector.broadcast %cst_92 : f32 to vector<8x256xf32>
    %221 = arith.addf %219, %220 : vector<8x256xf32>
    %222 = arith.select %32, %217, %221 : vector<8x256xi1>, vector<8x256xf32>
    %223 = vector.extract_strided_slice %222 {offsets = [0, 0], sizes = [8, 64], strides = [1, 1]} : vector<8x256xf32> to vector<8x64xf32>
    %224 = vector.extract_strided_slice %222 {offsets = [0, 64], sizes = [8, 64], strides = [1, 1]} : vector<8x256xf32> to vector<8x64xf32>
    %225 = vector.extract_strided_slice %222 {offsets = [0, 128], sizes = [8, 64], strides = [1, 1]} : vector<8x256xf32> to vector<8x64xf32>
    %226 = vector.extract_strided_slice %222 {offsets = [0, 192], sizes = [8, 64], strides = [1, 1]} : vector<8x256xf32> to vector<8x64xf32>
    %227 = arith.mulf %224, %195 : vector<8x64xf32>
    %228 = arith.mulf %223, %225 : vector<8x64xf32>
    %229 = arith.addf %227, %228 : vector<8x64xf32>
    %230 = math.tanh %229 : vector<8x64xf32>
    %231 = arith.mulf %226, %230 : vector<8x64xf32>
    %232 = vector.extract_strided_slice %231 {offsets = [0, 0], sizes = [8, 32], strides = [1, 1]} : vector<8x64xf32> to vector<8x32xf32>
    %c5_93 = arith.constant 5 : index
    %c0_94 = arith.constant 0 : index
    %c0_95 = arith.constant 0 : index
    %233 = vector.load %arg9[%c5_93, %c0_94, %c0_95] : memref<16x8x64xf32, #tpu.memory_space<vmem>>, vector<1x8x32xf32>
    %234 = vector.shape_cast %233 : vector<1x8x32xf32> to vector<8x32xf32>
    %235 = vector.shape_cast %232 : vector<8x32xf32> to vector<1x8x32xf32>
    tpu.vector_store %arg9[%c5_93, %c0_94, %c0_95], %235 {strides = array<i32>} : memref<16x8x64xf32, #tpu.memory_space<vmem>>, vector<1x8x32xf32>,
    %236 = vector.extract_strided_slice %231 {offsets = [0, 32], sizes = [8, 32], strides = [1, 1]} : vector<8x64xf32> to vector<8x32xf32>
    %c10_96 = arith.constant 10 : index
    %c0_97 = arith.constant 0 : index
    %c32_98 = arith.constant 32 : index
    %237 = vector.load %arg9[%c10_96, %c0_97, %c32_98] : memref<16x8x64xf32, #tpu.memory_space<vmem>>, vector<1x8x32xf32>
    %238 = vector.shape_cast %237 : vector<1x8x32xf32> to vector<8x32xf32>
    %239 = vector.shape_cast %236 : vector<8x32xf32> to vector<1x8x32xf32>
    tpu.vector_store %arg9[%c10_96, %c0_97, %c32_98], %239 {strides = array<i32>} : memref<16x8x64xf32, #tpu.memory_space<vmem>>, vector<1x8x32xf32>,
    %c6 = arith.constant 6 : index
    %c0_99 = arith.constant 0 : index
    %c0_100 = arith.constant 0 : index
    %240 = vector.load %arg8[%c6, %c0_99, %c0_100] : memref<16x8x256xf32, #tpu.memory_space<vmem>>, vector<1x8x256xf32>
    %241 = vector.shape_cast %240 : vector<1x8x256xf32> to vector<8x256xf32>
    %c9 = arith.constant 9 : index
    %c0_101 = arith.constant 0 : index
    %c0_102 = arith.constant 0 : index
    %242 = vector.load %arg8[%c9, %c0_101, %c0_102] : memref<16x8x256xf32, #tpu.memory_space<vmem>>, vector<1x8x256xf32>
    %243 = vector.shape_cast %242 : vector<1x8x256xf32> to vector<8x256xf32>
    %244 = arith.select %27, %241, %243 : vector<8x256xi1>, vector<8x256xf32>
    %245 = arith.truncf %231 : vector<8x64xf32> to vector<8x64xbf16>
    %cst_103 = arith.constant dense<0.000000e+00> : vector<8x256xf32>
    %246 = tpu.matmul %245, %33, %cst_103 {dimension_numbers = #tpu.dot_dimension_numbers<[1], [0], [0], [1], [0, 0, 1, 1], [], []>} : vector<8x64xbf16>, vector<64x256xbf16>, vector<8x256xf32> -> vector<8x256xf32>
    %247 = arith.addf %244, %246 : vector<8x256xf32>
    %cst_104 = arith.constant 5.000000e-01 : f32
    %248 = vector.broadcast %cst_104 : f32 to vector<8x256xf32>
    %249 = arith.mulf %248, %247 : vector<8x256xf32>
    %250 = arith.select %32, %247, %249 : vector<8x256xi1>, vector<8x256xf32>
    %251 = math.tanh %250 : vector<8x256xf32>
    %cst_105 = arith.constant 5.000000e-01 : f32
    %252 = vector.broadcast %cst_105 : f32 to vector<8x256xf32>
    %253 = arith.mulf %252, %251 : vector<8x256xf32>
    %cst_106 = arith.constant 5.000000e-01 : f32
    %254 = vector.broadcast %cst_106 : f32 to vector<8x256xf32>
    %255 = arith.addf %253, %254 : vector<8x256xf32>
    %256 = arith.select %32, %251, %255 : vector<8x256xi1>, vector<8x256xf32>
    %257 = vector.extract_strided_slice %256 {offsets = [0, 0], sizes = [8, 64], strides = [1, 1]} : vector<8x256xf32> to vector<8x64xf32>
    %258 = vector.extract_strided_slice %256 {offsets = [0, 64], sizes = [8, 64], strides = [1, 1]} : vector<8x256xf32> to vector<8x64xf32>
    %259 = vector.extract_strided_slice %256 {offsets = [0, 128], sizes = [8, 64], strides = [1, 1]} : vector<8x256xf32> to vector<8x64xf32>
    %260 = vector.extract_strided_slice %256 {offsets = [0, 192], sizes = [8, 64], strides = [1, 1]} : vector<8x256xf32> to vector<8x64xf32>
    %261 = arith.mulf %258, %229 : vector<8x64xf32>
    %262 = arith.mulf %257, %259 : vector<8x64xf32>
    %263 = arith.addf %261, %262 : vector<8x64xf32>
    %264 = math.tanh %263 : vector<8x64xf32>
    %265 = arith.mulf %260, %264 : vector<8x64xf32>
    %266 = vector.extract_strided_slice %265 {offsets = [0, 0], sizes = [8, 32], strides = [1, 1]} : vector<8x64xf32> to vector<8x32xf32>
    %c6_107 = arith.constant 6 : index
    %c0_108 = arith.constant 0 : index
    %c0_109 = arith.constant 0 : index
    %267 = vector.load %arg9[%c6_107, %c0_108, %c0_109] : memref<16x8x64xf32, #tpu.memory_space<vmem>>, vector<1x8x32xf32>
    %268 = vector.shape_cast %267 : vector<1x8x32xf32> to vector<8x32xf32>
    %269 = vector.shape_cast %266 : vector<8x32xf32> to vector<1x8x32xf32>
    tpu.vector_store %arg9[%c6_107, %c0_108, %c0_109], %269 {strides = array<i32>} : memref<16x8x64xf32, #tpu.memory_space<vmem>>, vector<1x8x32xf32>,
    %270 = vector.extract_strided_slice %265 {offsets = [0, 32], sizes = [8, 32], strides = [1, 1]} : vector<8x64xf32> to vector<8x32xf32>
    %c9_110 = arith.constant 9 : index
    %c0_111 = arith.constant 0 : index
    %c32_112 = arith.constant 32 : index
    %271 = vector.load %arg9[%c9_110, %c0_111, %c32_112] : memref<16x8x64xf32, #tpu.memory_space<vmem>>, vector<1x8x32xf32>
    %272 = vector.shape_cast %271 : vector<1x8x32xf32> to vector<8x32xf32>
    %273 = vector.shape_cast %270 : vector<8x32xf32> to vector<1x8x32xf32>
    tpu.vector_store %arg9[%c9_110, %c0_111, %c32_112], %273 {strides = array<i32>} : memref<16x8x64xf32, #tpu.memory_space<vmem>>, vector<1x8x32xf32>,
    %c7 = arith.constant 7 : index
    %c0_113 = arith.constant 0 : index
    %c0_114 = arith.constant 0 : index
    %274 = vector.load %arg8[%c7, %c0_113, %c0_114] : memref<16x8x256xf32, #tpu.memory_space<vmem>>, vector<1x8x256xf32>
    %275 = vector.shape_cast %274 : vector<1x8x256xf32> to vector<8x256xf32>
    %c8 = arith.constant 8 : index
    %c0_115 = arith.constant 0 : index
    %c0_116 = arith.constant 0 : index
    %276 = vector.load %arg8[%c8, %c0_115, %c0_116] : memref<16x8x256xf32, #tpu.memory_space<vmem>>, vector<1x8x256xf32>
    %277 = vector.shape_cast %276 : vector<1x8x256xf32> to vector<8x256xf32>
    %278 = arith.select %27, %275, %277 : vector<8x256xi1>, vector<8x256xf32>
    %279 = arith.truncf %265 : vector<8x64xf32> to vector<8x64xbf16>
    %cst_117 = arith.constant dense<0.000000e+00> : vector<8x256xf32>
    %280 = tpu.matmul %279, %33, %cst_117 {dimension_numbers = #tpu.dot_dimension_numbers<[1], [0], [0], [1], [0, 0, 1, 1], [], []>} : vector<8x64xbf16>, vector<64x256xbf16>, vector<8x256xf32> -> vector<8x256xf32>
    %281 = arith.addf %278, %280 : vector<8x256xf32>
    %cst_118 = arith.constant 5.000000e-01 : f32
    %282 = vector.broadcast %cst_118 : f32 to vector<8x256xf32>
    %283 = arith.mulf %282, %281 : vector<8x256xf32>
    %284 = arith.select %32, %281, %283 : vector<8x256xi1>, vector<8x256xf32>
    %285 = math.tanh %284 : vector<8x256xf32>
    %cst_119 = arith.constant 5.000000e-01 : f32
    %286 = vector.broadcast %cst_119 : f32 to vector<8x256xf32>
    %287 = arith.mulf %286, %285 : vector<8x256xf32>
    %cst_120 = arith.constant 5.000000e-01 : f32
    %288 = vector.broadcast %cst_120 : f32 to vector<8x256xf32>
    %289 = arith.addf %287, %288 : vector<8x256xf32>
    %290 = arith.select %32, %285, %289 : vector<8x256xi1>, vector<8x256xf32>
    %291 = vector.extract_strided_slice %290 {offsets = [0, 0], sizes = [8, 64], strides = [1, 1]} : vector<8x256xf32> to vector<8x64xf32>
    %292 = vector.extract_strided_slice %290 {offsets = [0, 64], sizes = [8, 64], strides = [1, 1]} : vector<8x256xf32> to vector<8x64xf32>
    %293 = vector.extract_strided_slice %290 {offsets = [0, 128], sizes = [8, 64], strides = [1, 1]} : vector<8x256xf32> to vector<8x64xf32>
    %294 = vector.extract_strided_slice %290 {offsets = [0, 192], sizes = [8, 64], strides = [1, 1]} : vector<8x256xf32> to vector<8x64xf32>
    %295 = arith.mulf %292, %263 : vector<8x64xf32>
    %296 = arith.mulf %291, %293 : vector<8x64xf32>
    %297 = arith.addf %295, %296 : vector<8x64xf32>
    %298 = math.tanh %297 : vector<8x64xf32>
    %299 = arith.mulf %294, %298 : vector<8x64xf32>
    %300 = vector.extract_strided_slice %299 {offsets = [0, 0], sizes = [8, 32], strides = [1, 1]} : vector<8x64xf32> to vector<8x32xf32>
    %c7_121 = arith.constant 7 : index
    %c0_122 = arith.constant 0 : index
    %c0_123 = arith.constant 0 : index
    %301 = vector.load %arg9[%c7_121, %c0_122, %c0_123] : memref<16x8x64xf32, #tpu.memory_space<vmem>>, vector<1x8x32xf32>
    %302 = vector.shape_cast %301 : vector<1x8x32xf32> to vector<8x32xf32>
    %303 = vector.shape_cast %300 : vector<8x32xf32> to vector<1x8x32xf32>
    tpu.vector_store %arg9[%c7_121, %c0_122, %c0_123], %303 {strides = array<i32>} : memref<16x8x64xf32, #tpu.memory_space<vmem>>, vector<1x8x32xf32>,
    %304 = vector.extract_strided_slice %299 {offsets = [0, 32], sizes = [8, 32], strides = [1, 1]} : vector<8x64xf32> to vector<8x32xf32>
    %c8_124 = arith.constant 8 : index
    %c0_125 = arith.constant 0 : index
    %c32_126 = arith.constant 32 : index
    %305 = vector.load %arg9[%c8_124, %c0_125, %c32_126] : memref<16x8x64xf32, #tpu.memory_space<vmem>>, vector<1x8x32xf32>
    %306 = vector.shape_cast %305 : vector<1x8x32xf32> to vector<8x32xf32>
    %307 = vector.shape_cast %304 : vector<8x32xf32> to vector<1x8x32xf32>
    tpu.vector_store %arg9[%c8_124, %c0_125, %c32_126], %307 {strides = array<i32>} : memref<16x8x64xf32, #tpu.memory_space<vmem>>, vector<1x8x32xf32>,
    %c8_127 = arith.constant 8 : index
    %c0_128 = arith.constant 0 : index
    %c0_129 = arith.constant 0 : index
    %308 = vector.load %arg8[%c8_127, %c0_128, %c0_129] : memref<16x8x256xf32, #tpu.memory_space<vmem>>, vector<1x8x256xf32>
    %309 = vector.shape_cast %308 : vector<1x8x256xf32> to vector<8x256xf32>
    %c7_130 = arith.constant 7 : index
    %c0_131 = arith.constant 0 : index
    %c0_132 = arith.constant 0 : index
    %310 = vector.load %arg8[%c7_130, %c0_131, %c0_132] : memref<16x8x256xf32, #tpu.memory_space<vmem>>, vector<1x8x256xf32>
    %311 = vector.shape_cast %310 : vector<1x8x256xf32> to vector<8x256xf32>
    %312 = arith.select %27, %309, %311 : vector<8x256xi1>, vector<8x256xf32>
    %313 = arith.truncf %299 : vector<8x64xf32> to vector<8x64xbf16>
    %cst_133 = arith.constant dense<0.000000e+00> : vector<8x256xf32>
    %314 = tpu.matmul %313, %33, %cst_133 {dimension_numbers = #tpu.dot_dimension_numbers<[1], [0], [0], [1], [0, 0, 1, 1], [], []>} : vector<8x64xbf16>, vector<64x256xbf16>, vector<8x256xf32> -> vector<8x256xf32>
    %315 = arith.addf %312, %314 : vector<8x256xf32>
    %cst_134 = arith.constant 5.000000e-01 : f32
    %316 = vector.broadcast %cst_134 : f32 to vector<8x256xf32>
    %317 = arith.mulf %316, %315 : vector<8x256xf32>
    %318 = arith.select %32, %315, %317 : vector<8x256xi1>, vector<8x256xf32>
    %319 = math.tanh %318 : vector<8x256xf32>
    %cst_135 = arith.constant 5.000000e-01 : f32
    %320 = vector.broadcast %cst_135 : f32 to vector<8x256xf32>
    %321 = arith.mulf %320, %319 : vector<8x256xf32>
    %cst_136 = arith.constant 5.000000e-01 : f32
    %322 = vector.broadcast %cst_136 : f32 to vector<8x256xf32>
    %323 = arith.addf %321, %322 : vector<8x256xf32>
    %324 = arith.select %32, %319, %323 : vector<8x256xi1>, vector<8x256xf32>
    %325 = vector.extract_strided_slice %324 {offsets = [0, 0], sizes = [8, 64], strides = [1, 1]} : vector<8x256xf32> to vector<8x64xf32>
    %326 = vector.extract_strided_slice %324 {offsets = [0, 64], sizes = [8, 64], strides = [1, 1]} : vector<8x256xf32> to vector<8x64xf32>
    %327 = vector.extract_strided_slice %324 {offsets = [0, 128], sizes = [8, 64], strides = [1, 1]} : vector<8x256xf32> to vector<8x64xf32>
    %328 = vector.extract_strided_slice %324 {offsets = [0, 192], sizes = [8, 64], strides = [1, 1]} : vector<8x256xf32> to vector<8x64xf32>
    %329 = arith.mulf %326, %297 : vector<8x64xf32>
    %330 = arith.mulf %325, %327 : vector<8x64xf32>
    %331 = arith.addf %329, %330 : vector<8x64xf32>
    %332 = math.tanh %331 : vector<8x64xf32>
    %333 = arith.mulf %328, %332 : vector<8x64xf32>
    %334 = vector.extract_strided_slice %333 {offsets = [0, 0], sizes = [8, 32], strides = [1, 1]} : vector<8x64xf32> to vector<8x32xf32>
    %c8_137 = arith.constant 8 : index
    %c0_138 = arith.constant 0 : index
    %c0_139 = arith.constant 0 : index
    %335 = vector.load %arg9[%c8_137, %c0_138, %c0_139] : memref<16x8x64xf32, #tpu.memory_space<vmem>>, vector<1x8x32xf32>
    %336 = vector.shape_cast %335 : vector<1x8x32xf32> to vector<8x32xf32>
    %337 = vector.shape_cast %334 : vector<8x32xf32> to vector<1x8x32xf32>
    tpu.vector_store %arg9[%c8_137, %c0_138, %c0_139], %337 {strides = array<i32>} : memref<16x8x64xf32, #tpu.memory_space<vmem>>, vector<1x8x32xf32>,
    %338 = vector.extract_strided_slice %333 {offsets = [0, 32], sizes = [8, 32], strides = [1, 1]} : vector<8x64xf32> to vector<8x32xf32>
    %c7_140 = arith.constant 7 : index
    %c0_141 = arith.constant 0 : index
    %c32_142 = arith.constant 32 : index
    %339 = vector.load %arg9[%c7_140, %c0_141, %c32_142] : memref<16x8x64xf32, #tpu.memory_space<vmem>>, vector<1x8x32xf32>
    %340 = vector.shape_cast %339 : vector<1x8x32xf32> to vector<8x32xf32>
    %341 = vector.shape_cast %338 : vector<8x32xf32> to vector<1x8x32xf32>
    tpu.vector_store %arg9[%c7_140, %c0_141, %c32_142], %341 {strides = array<i32>} : memref<16x8x64xf32, #tpu.memory_space<vmem>>, vector<1x8x32xf32>,
    %c9_143 = arith.constant 9 : index
    %c0_144 = arith.constant 0 : index
    %c0_145 = arith.constant 0 : index
    %342 = vector.load %arg8[%c9_143, %c0_144, %c0_145] : memref<16x8x256xf32, #tpu.memory_space<vmem>>, vector<1x8x256xf32>
    %343 = vector.shape_cast %342 : vector<1x8x256xf32> to vector<8x256xf32>
    %c6_146 = arith.constant 6 : index
    %c0_147 = arith.constant 0 : index
    %c0_148 = arith.constant 0 : index
    %344 = vector.load %arg8[%c6_146, %c0_147, %c0_148] : memref<16x8x256xf32, #tpu.memory_space<vmem>>, vector<1x8x256xf32>
    %345 = vector.shape_cast %344 : vector<1x8x256xf32> to vector<8x256xf32>
    %346 = arith.select %27, %343, %345 : vector<8x256xi1>, vector<8x256xf32>
    %347 = arith.truncf %333 : vector<8x64xf32> to vector<8x64xbf16>
    %cst_149 = arith.constant dense<0.000000e+00> : vector<8x256xf32>
    %348 = tpu.matmul %347, %33, %cst_149 {dimension_numbers = #tpu.dot_dimension_numbers<[1], [0], [0], [1], [0, 0, 1, 1], [], []>} : vector<8x64xbf16>, vector<64x256xbf16>, vector<8x256xf32> -> vector<8x256xf32>
    %349 = arith.addf %346, %348 : vector<8x256xf32>
    %cst_150 = arith.constant 5.000000e-01 : f32
    %350 = vector.broadcast %cst_150 : f32 to vector<8x256xf32>
    %351 = arith.mulf %350, %349 : vector<8x256xf32>
    %352 = arith.select %32, %349, %351 : vector<8x256xi1>, vector<8x256xf32>
    %353 = math.tanh %352 : vector<8x256xf32>
    %cst_151 = arith.constant 5.000000e-01 : f32
    %354 = vector.broadcast %cst_151 : f32 to vector<8x256xf32>
    %355 = arith.mulf %354, %353 : vector<8x256xf32>
    %cst_152 = arith.constant 5.000000e-01 : f32
    %356 = vector.broadcast %cst_152 : f32 to vector<8x256xf32>
    %357 = arith.addf %355, %356 : vector<8x256xf32>
    %358 = arith.select %32, %353, %357 : vector<8x256xi1>, vector<8x256xf32>
    %359 = vector.extract_strided_slice %358 {offsets = [0, 0], sizes = [8, 64], strides = [1, 1]} : vector<8x256xf32> to vector<8x64xf32>
    %360 = vector.extract_strided_slice %358 {offsets = [0, 64], sizes = [8, 64], strides = [1, 1]} : vector<8x256xf32> to vector<8x64xf32>
    %361 = vector.extract_strided_slice %358 {offsets = [0, 128], sizes = [8, 64], strides = [1, 1]} : vector<8x256xf32> to vector<8x64xf32>
    %362 = vector.extract_strided_slice %358 {offsets = [0, 192], sizes = [8, 64], strides = [1, 1]} : vector<8x256xf32> to vector<8x64xf32>
    %363 = arith.mulf %360, %331 : vector<8x64xf32>
    %364 = arith.mulf %359, %361 : vector<8x64xf32>
    %365 = arith.addf %363, %364 : vector<8x64xf32>
    %366 = math.tanh %365 : vector<8x64xf32>
    %367 = arith.mulf %362, %366 : vector<8x64xf32>
    %368 = vector.extract_strided_slice %367 {offsets = [0, 0], sizes = [8, 32], strides = [1, 1]} : vector<8x64xf32> to vector<8x32xf32>
    %c9_153 = arith.constant 9 : index
    %c0_154 = arith.constant 0 : index
    %c0_155 = arith.constant 0 : index
    %369 = vector.load %arg9[%c9_153, %c0_154, %c0_155] : memref<16x8x64xf32, #tpu.memory_space<vmem>>, vector<1x8x32xf32>
    %370 = vector.shape_cast %369 : vector<1x8x32xf32> to vector<8x32xf32>
    %371 = vector.shape_cast %368 : vector<8x32xf32> to vector<1x8x32xf32>
    tpu.vector_store %arg9[%c9_153, %c0_154, %c0_155], %371 {strides = array<i32>} : memref<16x8x64xf32, #tpu.memory_space<vmem>>, vector<1x8x32xf32>,
    %372 = vector.extract_strided_slice %367 {offsets = [0, 32], sizes = [8, 32], strides = [1, 1]} : vector<8x64xf32> to vector<8x32xf32>
    %c6_156 = arith.constant 6 : index
    %c0_157 = arith.constant 0 : index
    %c32_158 = arith.constant 32 : index
    %373 = vector.load %arg9[%c6_156, %c0_157, %c32_158] : memref<16x8x64xf32, #tpu.memory_space<vmem>>, vector<1x8x32xf32>
    %374 = vector.shape_cast %373 : vector<1x8x32xf32> to vector<8x32xf32>
    %375 = vector.shape_cast %372 : vector<8x32xf32> to vector<1x8x32xf32>
    tpu.vector_store %arg9[%c6_156, %c0_157, %c32_158], %375 {strides = array<i32>} : memref<16x8x64xf32, #tpu.memory_space<vmem>>, vector<1x8x32xf32>,
    %c10_159 = arith.constant 10 : index
    %c0_160 = arith.constant 0 : index
    %c0_161 = arith.constant 0 : index
    %376 = vector.load %arg8[%c10_159, %c0_160, %c0_161] : memref<16x8x256xf32, #tpu.memory_space<vmem>>, vector<1x8x256xf32>
    %377 = vector.shape_cast %376 : vector<1x8x256xf32> to vector<8x256xf32>
    %c5_162 = arith.constant 5 : index
    %c0_163 = arith.constant 0 : index
    %c0_164 = arith.constant 0 : index
    %378 = vector.load %arg8[%c5_162, %c0_163, %c0_164] : memref<16x8x256xf32, #tpu.memory_space<vmem>>, vector<1x8x256xf32>
    %379 = vector.shape_cast %378 : vector<1x8x256xf32> to vector<8x256xf32>
    %380 = arith.select %27, %377, %379 : vector<8x256xi1>, vector<8x256xf32>
    %381 = arith.truncf %367 : vector<8x64xf32> to vector<8x64xbf16>
    %cst_165 = arith.constant dense<0.000000e+00> : vector<8x256xf32>
    %382 = tpu.matmul %381, %33, %cst_165 {dimension_numbers = #tpu.dot_dimension_numbers<[1], [0], [0], [1], [0, 0, 1, 1], [], []>} : vector<8x64xbf16>, vector<64x256xbf16>, vector<8x256xf32> -> vector<8x256xf32>
    %383 = arith.addf %380, %382 : vector<8x256xf32>
    %cst_166 = arith.constant 5.000000e-01 : f32
    %384 = vector.broadcast %cst_166 : f32 to vector<8x256xf32>
    %385 = arith.mulf %384, %383 : vector<8x256xf32>
    %386 = arith.select %32, %383, %385 : vector<8x256xi1>, vector<8x256xf32>
    %387 = math.tanh %386 : vector<8x256xf32>
    %cst_167 = arith.constant 5.000000e-01 : f32
    %388 = vector.broadcast %cst_167 : f32 to vector<8x256xf32>
    %389 = arith.mulf %388, %387 : vector<8x256xf32>
    %cst_168 = arith.constant 5.000000e-01 : f32
    %390 = vector.broadcast %cst_168 : f32 to vector<8x256xf32>
    %391 = arith.addf %389, %390 : vector<8x256xf32>
    %392 = arith.select %32, %387, %391 : vector<8x256xi1>, vector<8x256xf32>
    %393 = vector.extract_strided_slice %392 {offsets = [0, 0], sizes = [8, 64], strides = [1, 1]} : vector<8x256xf32> to vector<8x64xf32>
    %394 = vector.extract_strided_slice %392 {offsets = [0, 64], sizes = [8, 64], strides = [1, 1]} : vector<8x256xf32> to vector<8x64xf32>
    %395 = vector.extract_strided_slice %392 {offsets = [0, 128], sizes = [8, 64], strides = [1, 1]} : vector<8x256xf32> to vector<8x64xf32>
    %396 = vector.extract_strided_slice %392 {offsets = [0, 192], sizes = [8, 64], strides = [1, 1]} : vector<8x256xf32> to vector<8x64xf32>
    %397 = arith.mulf %394, %365 : vector<8x64xf32>
    %398 = arith.mulf %393, %395 : vector<8x64xf32>
    %399 = arith.addf %397, %398 : vector<8x64xf32>
    %400 = math.tanh %399 : vector<8x64xf32>
    %401 = arith.mulf %396, %400 : vector<8x64xf32>
    %402 = vector.extract_strided_slice %401 {offsets = [0, 0], sizes = [8, 32], strides = [1, 1]} : vector<8x64xf32> to vector<8x32xf32>
    %c10_169 = arith.constant 10 : index
    %c0_170 = arith.constant 0 : index
    %c0_171 = arith.constant 0 : index
    %403 = vector.load %arg9[%c10_169, %c0_170, %c0_171] : memref<16x8x64xf32, #tpu.memory_space<vmem>>, vector<1x8x32xf32>
    %404 = vector.shape_cast %403 : vector<1x8x32xf32> to vector<8x32xf32>
    %405 = vector.shape_cast %402 : vector<8x32xf32> to vector<1x8x32xf32>
    tpu.vector_store %arg9[%c10_169, %c0_170, %c0_171], %405 {strides = array<i32>} : memref<16x8x64xf32, #tpu.memory_space<vmem>>, vector<1x8x32xf32>,
    %406 = vector.extract_strided_slice %401 {offsets = [0, 32], sizes = [8, 32], strides = [1, 1]} : vector<8x64xf32> to vector<8x32xf32>
    %c5_172 = arith.constant 5 : index
    %c0_173 = arith.constant 0 : index
    %c32_174 = arith.constant 32 : index
    %407 = vector.load %arg9[%c5_172, %c0_173, %c32_174] : memref<16x8x64xf32, #tpu.memory_space<vmem>>, vector<1x8x32xf32>
    %408 = vector.shape_cast %407 : vector<1x8x32xf32> to vector<8x32xf32>
    %409 = vector.shape_cast %406 : vector<8x32xf32> to vector<1x8x32xf32>
    tpu.vector_store %arg9[%c5_172, %c0_173, %c32_174], %409 {strides = array<i32>} : memref<16x8x64xf32, #tpu.memory_space<vmem>>, vector<1x8x32xf32>,
    %c11_175 = arith.constant 11 : index
    %c0_176 = arith.constant 0 : index
    %c0_177 = arith.constant 0 : index
    %410 = vector.load %arg8[%c11_175, %c0_176, %c0_177] : memref<16x8x256xf32, #tpu.memory_space<vmem>>, vector<1x8x256xf32>
    %411 = vector.shape_cast %410 : vector<1x8x256xf32> to vector<8x256xf32>
    %c4_178 = arith.constant 4 : index
    %c0_179 = arith.constant 0 : index
    %c0_180 = arith.constant 0 : index
    %412 = vector.load %arg8[%c4_178, %c0_179, %c0_180] : memref<16x8x256xf32, #tpu.memory_space<vmem>>, vector<1x8x256xf32>
    %413 = vector.shape_cast %412 : vector<1x8x256xf32> to vector<8x256xf32>
    %414 = arith.select %27, %411, %413 : vector<8x256xi1>, vector<8x256xf32>
    %415 = arith.truncf %401 : vector<8x64xf32> to vector<8x64xbf16>
    %cst_181 = arith.constant dense<0.000000e+00> : vector<8x256xf32>
    %416 = tpu.matmul %415, %33, %cst_181 {dimension_numbers = #tpu.dot_dimension_numbers<[1], [0], [0], [1], [0, 0, 1, 1], [], []>} : vector<8x64xbf16>, vector<64x256xbf16>, vector<8x256xf32> -> vector<8x256xf32>
    %417 = arith.addf %414, %416 : vector<8x256xf32>
    %cst_182 = arith.constant 5.000000e-01 : f32
    %418 = vector.broadcast %cst_182 : f32 to vector<8x256xf32>
    %419 = arith.mulf %418, %417 : vector<8x256xf32>
    %420 = arith.select %32, %417, %419 : vector<8x256xi1>, vector<8x256xf32>
    %421 = math.tanh %420 : vector<8x256xf32>
    %cst_183 = arith.constant 5.000000e-01 : f32
    %422 = vector.broadcast %cst_183 : f32 to vector<8x256xf32>
    %423 = arith.mulf %422, %421 : vector<8x256xf32>
    %cst_184 = arith.constant 5.000000e-01 : f32
    %424 = vector.broadcast %cst_184 : f32 to vector<8x256xf32>
    %425 = arith.addf %423, %424 : vector<8x256xf32>
    %426 = arith.select %32, %421, %425 : vector<8x256xi1>, vector<8x256xf32>
    %427 = vector.extract_strided_slice %426 {offsets = [0, 0], sizes = [8, 64], strides = [1, 1]} : vector<8x256xf32> to vector<8x64xf32>
    %428 = vector.extract_strided_slice %426 {offsets = [0, 64], sizes = [8, 64], strides = [1, 1]} : vector<8x256xf32> to vector<8x64xf32>
    %429 = vector.extract_strided_slice %426 {offsets = [0, 128], sizes = [8, 64], strides = [1, 1]} : vector<8x256xf32> to vector<8x64xf32>
    %430 = vector.extract_strided_slice %426 {offsets = [0, 192], sizes = [8, 64], strides = [1, 1]} : vector<8x256xf32> to vector<8x64xf32>
    %431 = arith.mulf %428, %399 : vector<8x64xf32>
    %432 = arith.mulf %427, %429 : vector<8x64xf32>
    %433 = arith.addf %431, %432 : vector<8x64xf32>
    %434 = math.tanh %433 : vector<8x64xf32>
    %435 = arith.mulf %430, %434 : vector<8x64xf32>
    %436 = vector.extract_strided_slice %435 {offsets = [0, 0], sizes = [8, 32], strides = [1, 1]} : vector<8x64xf32> to vector<8x32xf32>
    %c11_185 = arith.constant 11 : index
    %c0_186 = arith.constant 0 : index
    %c0_187 = arith.constant 0 : index
    %437 = vector.load %arg9[%c11_185, %c0_186, %c0_187] : memref<16x8x64xf32, #tpu.memory_space<vmem>>, vector<1x8x32xf32>
    %438 = vector.shape_cast %437 : vector<1x8x32xf32> to vector<8x32xf32>
    %439 = vector.shape_cast %436 : vector<8x32xf32> to vector<1x8x32xf32>
    tpu.vector_store %arg9[%c11_185, %c0_186, %c0_187], %439 {strides = array<i32>} : memref<16x8x64xf32, #tpu.memory_space<vmem>>, vector<1x8x32xf32>,
    %440 = vector.extract_strided_slice %435 {offsets = [0, 32], sizes = [8, 32], strides = [1, 1]} : vector<8x64xf32> to vector<8x32xf32>
    %c4_188 = arith.constant 4 : index
    %c0_189 = arith.constant 0 : index
    %c32_190 = arith.constant 32 : index
    %441 = vector.load %arg9[%c4_188, %c0_189, %c32_190] : memref<16x8x64xf32, #tpu.memory_space<vmem>>, vector<1x8x32xf32>
    %442 = vector.shape_cast %441 : vector<1x8x32xf32> to vector<8x32xf32>
    %443 = vector.shape_cast %440 : vector<8x32xf32> to vector<1x8x32xf32>
    tpu.vector_store %arg9[%c4_188, %c0_189, %c32_190], %443 {strides = array<i32>} : memref<16x8x64xf32, #tpu.memory_space<vmem>>, vector<1x8x32xf32>,
    %c12_191 = arith.constant 12 : index
    %c0_192 = arith.constant 0 : index
    %c0_193 = arith.constant 0 : index
    %444 = vector.load %arg8[%c12_191, %c0_192, %c0_193] : memref<16x8x256xf32, #tpu.memory_space<vmem>>, vector<1x8x256xf32>
    %445 = vector.shape_cast %444 : vector<1x8x256xf32> to vector<8x256xf32>
    %c3_194 = arith.constant 3 : index
    %c0_195 = arith.constant 0 : index
    %c0_196 = arith.constant 0 : index
    %446 = vector.load %arg8[%c3_194, %c0_195, %c0_196] : memref<16x8x256xf32, #tpu.memory_space<vmem>>, vector<1x8x256xf32>
    %447 = vector.shape_cast %446 : vector<1x8x256xf32> to vector<8x256xf32>
    %448 = arith.select %27, %445, %447 : vector<8x256xi1>, vector<8x256xf32>
    %449 = arith.truncf %435 : vector<8x64xf32> to vector<8x64xbf16>
    %cst_197 = arith.constant dense<0.000000e+00> : vector<8x256xf32>
    %450 = tpu.matmul %449, %33, %cst_197 {dimension_numbers = #tpu.dot_dimension_numbers<[1], [0], [0], [1], [0, 0, 1, 1], [], []>} : vector<8x64xbf16>, vector<64x256xbf16>, vector<8x256xf32> -> vector<8x256xf32>
    %451 = arith.addf %448, %450 : vector<8x256xf32>
    %cst_198 = arith.constant 5.000000e-01 : f32
    %452 = vector.broadcast %cst_198 : f32 to vector<8x256xf32>
    %453 = arith.mulf %452, %451 : vector<8x256xf32>
    %454 = arith.select %32, %451, %453 : vector<8x256xi1>, vector<8x256xf32>
    %455 = math.tanh %454 : vector<8x256xf32>
    %cst_199 = arith.constant 5.000000e-01 : f32
    %456 = vector.broadcast %cst_199 : f32 to vector<8x256xf32>
    %457 = arith.mulf %456, %455 : vector<8x256xf32>
    %cst_200 = arith.constant 5.000000e-01 : f32
    %458 = vector.broadcast %cst_200 : f32 to vector<8x256xf32>
    %459 = arith.addf %457, %458 : vector<8x256xf32>
    %460 = arith.select %32, %455, %459 : vector<8x256xi1>, vector<8x256xf32>
    %461 = vector.extract_strided_slice %460 {offsets = [0, 0], sizes = [8, 64], strides = [1, 1]} : vector<8x256xf32> to vector<8x64xf32>
    %462 = vector.extract_strided_slice %460 {offsets = [0, 64], sizes = [8, 64], strides = [1, 1]} : vector<8x256xf32> to vector<8x64xf32>
    %463 = vector.extract_strided_slice %460 {offsets = [0, 128], sizes = [8, 64], strides = [1, 1]} : vector<8x256xf32> to vector<8x64xf32>
    %464 = vector.extract_strided_slice %460 {offsets = [0, 192], sizes = [8, 64], strides = [1, 1]} : vector<8x256xf32> to vector<8x64xf32>
    %465 = arith.mulf %462, %433 : vector<8x64xf32>
    %466 = arith.mulf %461, %463 : vector<8x64xf32>
    %467 = arith.addf %465, %466 : vector<8x64xf32>
    %468 = math.tanh %467 : vector<8x64xf32>
    %469 = arith.mulf %464, %468 : vector<8x64xf32>
    %470 = vector.extract_strided_slice %469 {offsets = [0, 0], sizes = [8, 32], strides = [1, 1]} : vector<8x64xf32> to vector<8x32xf32>
    %c12_201 = arith.constant 12 : index
    %c0_202 = arith.constant 0 : index
    %c0_203 = arith.constant 0 : index
    %471 = vector.load %arg9[%c12_201, %c0_202, %c0_203] : memref<16x8x64xf32, #tpu.memory_space<vmem>>, vector<1x8x32xf32>
    %472 = vector.shape_cast %471 : vector<1x8x32xf32> to vector<8x32xf32>
    %473 = vector.shape_cast %470 : vector<8x32xf32> to vector<1x8x32xf32>
    tpu.vector_store %arg9[%c12_201, %c0_202, %c0_203], %473 {strides = array<i32>} : memref<16x8x64xf32, #tpu.memory_space<vmem>>, vector<1x8x32xf32>,
    %474 = vector.extract_strided_slice %469 {offsets = [0, 32], sizes = [8, 32], strides = [1, 1]} : vector<8x64xf32> to vector<8x32xf32>
    %c3_204 = arith.constant 3 : index
    %c0_205 = arith.constant 0 : index
    %c32_206 = arith.constant 32 : index
    %475 = vector.load %arg9[%c3_204, %c0_205, %c32_206] : memref<16x8x64xf32, #tpu.memory_space<vmem>>, vector<1x8x32xf32>
    %476 = vector.shape_cast %475 : vector<1x8x32xf32> to vector<8x32xf32>
    %477 = vector.shape_cast %474 : vector<8x32xf32> to vector<1x8x32xf32>
    tpu.vector_store %arg9[%c3_204, %c0_205, %c32_206], %477 {strides = array<i32>} : memref<16x8x64xf32, #tpu.memory_space<vmem>>, vector<1x8x32xf32>,
    %c13_207 = arith.constant 13 : index
    %c0_208 = arith.constant 0 : index
    %c0_209 = arith.constant 0 : index
    %478 = vector.load %arg8[%c13_207, %c0_208, %c0_209] : memref<16x8x256xf32, #tpu.memory_space<vmem>>, vector<1x8x256xf32>
    %479 = vector.shape_cast %478 : vector<1x8x256xf32> to vector<8x256xf32>
    %c2_210 = arith.constant 2 : index
    %c0_211 = arith.constant 0 : index
    %c0_212 = arith.constant 0 : index
    %480 = vector.load %arg8[%c2_210, %c0_211, %c0_212] : memref<16x8x256xf32, #tpu.memory_space<vmem>>, vector<1x8x256xf32>
    %481 = vector.shape_cast %480 : vector<1x8x256xf32> to vector<8x256xf32>
    %482 = arith.select %27, %479, %481 : vector<8x256xi1>, vector<8x256xf32>
    %483 = arith.truncf %469 : vector<8x64xf32> to vector<8x64xbf16>
    %cst_213 = arith.constant dense<0.000000e+00> : vector<8x256xf32>
    %484 = tpu.matmul %483, %33, %cst_213 {dimension_numbers = #tpu.dot_dimension_numbers<[1], [0], [0], [1], [0, 0, 1, 1], [], []>} : vector<8x64xbf16>, vector<64x256xbf16>, vector<8x256xf32> -> vector<8x256xf32>
    %485 = arith.addf %482, %484 : vector<8x256xf32>
    %cst_214 = arith.constant 5.000000e-01 : f32
    %486 = vector.broadcast %cst_214 : f32 to vector<8x256xf32>
    %487 = arith.mulf %486, %485 : vector<8x256xf32>
    %488 = arith.select %32, %485, %487 : vector<8x256xi1>, vector<8x256xf32>
    %489 = math.tanh %488 : vector<8x256xf32>
    %cst_215 = arith.constant 5.000000e-01 : f32
    %490 = vector.broadcast %cst_215 : f32 to vector<8x256xf32>
    %491 = arith.mulf %490, %489 : vector<8x256xf32>
    %cst_216 = arith.constant 5.000000e-01 : f32
    %492 = vector.broadcast %cst_216 : f32 to vector<8x256xf32>
    %493 = arith.addf %491, %492 : vector<8x256xf32>
    %494 = arith.select %32, %489, %493 : vector<8x256xi1>, vector<8x256xf32>
    %495 = vector.extract_strided_slice %494 {offsets = [0, 0], sizes = [8, 64], strides = [1, 1]} : vector<8x256xf32> to vector<8x64xf32>
    %496 = vector.extract_strided_slice %494 {offsets = [0, 64], sizes = [8, 64], strides = [1, 1]} : vector<8x256xf32> to vector<8x64xf32>
    %497 = vector.extract_strided_slice %494 {offsets = [0, 128], sizes = [8, 64], strides = [1, 1]} : vector<8x256xf32> to vector<8x64xf32>
    %498 = vector.extract_strided_slice %494 {offsets = [0, 192], sizes = [8, 64], strides = [1, 1]} : vector<8x256xf32> to vector<8x64xf32>
    %499 = arith.mulf %496, %467 : vector<8x64xf32>
    %500 = arith.mulf %495, %497 : vector<8x64xf32>
    %501 = arith.addf %499, %500 : vector<8x64xf32>
    %502 = math.tanh %501 : vector<8x64xf32>
    %503 = arith.mulf %498, %502 : vector<8x64xf32>
    %504 = vector.extract_strided_slice %503 {offsets = [0, 0], sizes = [8, 32], strides = [1, 1]} : vector<8x64xf32> to vector<8x32xf32>
    %c13_217 = arith.constant 13 : index
    %c0_218 = arith.constant 0 : index
    %c0_219 = arith.constant 0 : index
    %505 = vector.load %arg9[%c13_217, %c0_218, %c0_219] : memref<16x8x64xf32, #tpu.memory_space<vmem>>, vector<1x8x32xf32>
    %506 = vector.shape_cast %505 : vector<1x8x32xf32> to vector<8x32xf32>
    %507 = vector.shape_cast %504 : vector<8x32xf32> to vector<1x8x32xf32>
    tpu.vector_store %arg9[%c13_217, %c0_218, %c0_219], %507 {strides = array<i32>} : memref<16x8x64xf32, #tpu.memory_space<vmem>>, vector<1x8x32xf32>,
    %508 = vector.extract_strided_slice %503 {offsets = [0, 32], sizes = [8, 32], strides = [1, 1]} : vector<8x64xf32> to vector<8x32xf32>
    %c2_220 = arith.constant 2 : index
    %c0_221 = arith.constant 0 : index
    %c32_222 = arith.constant 32 : index
    %509 = vector.load %arg9[%c2_220, %c0_221, %c32_222] : memref<16x8x64xf32, #tpu.memory_space<vmem>>, vector<1x8x32xf32>
    %510 = vector.shape_cast %509 : vector<1x8x32xf32> to vector<8x32xf32>
    %511 = vector.shape_cast %508 : vector<8x32xf32> to vector<1x8x32xf32>
    tpu.vector_store %arg9[%c2_220, %c0_221, %c32_222], %511 {strides = array<i32>} : memref<16x8x64xf32, #tpu.memory_space<vmem>>, vector<1x8x32xf32>,
    %c14_223 = arith.constant 14 : index
    %c0_224 = arith.constant 0 : index
    %c0_225 = arith.constant 0 : index
    %512 = vector.load %arg8[%c14_223, %c0_224, %c0_225] : memref<16x8x256xf32, #tpu.memory_space<vmem>>, vector<1x8x256xf32>
    %513 = vector.shape_cast %512 : vector<1x8x256xf32> to vector<8x256xf32>
    %c1_226 = arith.constant 1 : index
    %c0_227 = arith.constant 0 : index
    %c0_228 = arith.constant 0 : index
    %514 = vector.load %arg8[%c1_226, %c0_227, %c0_228] : memref<16x8x256xf32, #tpu.memory_space<vmem>>, vector<1x8x256xf32>
    %515 = vector.shape_cast %514 : vector<1x8x256xf32> to vector<8x256xf32>
    %516 = arith.select %27, %513, %515 : vector<8x256xi1>, vector<8x256xf32>
    %517 = arith.truncf %503 : vector<8x64xf32> to vector<8x64xbf16>
    %cst_229 = arith.constant dense<0.000000e+00> : vector<8x256xf32>
    %518 = tpu.matmul %517, %33, %cst_229 {dimension_numbers = #tpu.dot_dimension_numbers<[1], [0], [0], [1], [0, 0, 1, 1], [], []>} : vector<8x64xbf16>, vector<64x256xbf16>, vector<8x256xf32> -> vector<8x256xf32>
    %519 = arith.addf %516, %518 : vector<8x256xf32>
    %cst_230 = arith.constant 5.000000e-01 : f32
    %520 = vector.broadcast %cst_230 : f32 to vector<8x256xf32>
    %521 = arith.mulf %520, %519 : vector<8x256xf32>
    %522 = arith.select %32, %519, %521 : vector<8x256xi1>, vector<8x256xf32>
    %523 = math.tanh %522 : vector<8x256xf32>
    %cst_231 = arith.constant 5.000000e-01 : f32
    %524 = vector.broadcast %cst_231 : f32 to vector<8x256xf32>
    %525 = arith.mulf %524, %523 : vector<8x256xf32>
    %cst_232 = arith.constant 5.000000e-01 : f32
    %526 = vector.broadcast %cst_232 : f32 to vector<8x256xf32>
    %527 = arith.addf %525, %526 : vector<8x256xf32>
    %528 = arith.select %32, %523, %527 : vector<8x256xi1>, vector<8x256xf32>
    %529 = vector.extract_strided_slice %528 {offsets = [0, 0], sizes = [8, 64], strides = [1, 1]} : vector<8x256xf32> to vector<8x64xf32>
    %530 = vector.extract_strided_slice %528 {offsets = [0, 64], sizes = [8, 64], strides = [1, 1]} : vector<8x256xf32> to vector<8x64xf32>
    %531 = vector.extract_strided_slice %528 {offsets = [0, 128], sizes = [8, 64], strides = [1, 1]} : vector<8x256xf32> to vector<8x64xf32>
    %532 = vector.extract_strided_slice %528 {offsets = [0, 192], sizes = [8, 64], strides = [1, 1]} : vector<8x256xf32> to vector<8x64xf32>
    %533 = arith.mulf %530, %501 : vector<8x64xf32>
    %534 = arith.mulf %529, %531 : vector<8x64xf32>
    %535 = arith.addf %533, %534 : vector<8x64xf32>
    %536 = math.tanh %535 : vector<8x64xf32>
    %537 = arith.mulf %532, %536 : vector<8x64xf32>
    %538 = vector.extract_strided_slice %537 {offsets = [0, 0], sizes = [8, 32], strides = [1, 1]} : vector<8x64xf32> to vector<8x32xf32>
    %c14_233 = arith.constant 14 : index
    %c0_234 = arith.constant 0 : index
    %c0_235 = arith.constant 0 : index
    %539 = vector.load %arg9[%c14_233, %c0_234, %c0_235] : memref<16x8x64xf32, #tpu.memory_space<vmem>>, vector<1x8x32xf32>
    %540 = vector.shape_cast %539 : vector<1x8x32xf32> to vector<8x32xf32>
    %541 = vector.shape_cast %538 : vector<8x32xf32> to vector<1x8x32xf32>
    tpu.vector_store %arg9[%c14_233, %c0_234, %c0_235], %541 {strides = array<i32>} : memref<16x8x64xf32, #tpu.memory_space<vmem>>, vector<1x8x32xf32>,
    %542 = vector.extract_strided_slice %537 {offsets = [0, 32], sizes = [8, 32], strides = [1, 1]} : vector<8x64xf32> to vector<8x32xf32>
    %c1_236 = arith.constant 1 : index
    %c0_237 = arith.constant 0 : index
    %c32_238 = arith.constant 32 : index
    %543 = vector.load %arg9[%c1_236, %c0_237, %c32_238] : memref<16x8x64xf32, #tpu.memory_space<vmem>>, vector<1x8x32xf32>
    %544 = vector.shape_cast %543 : vector<1x8x32xf32> to vector<8x32xf32>
    %545 = vector.shape_cast %542 : vector<8x32xf32> to vector<1x8x32xf32>
    tpu.vector_store %arg9[%c1_236, %c0_237, %c32_238], %545 {strides = array<i32>} : memref<16x8x64xf32, #tpu.memory_space<vmem>>, vector<1x8x32xf32>,
    %c15_239 = arith.constant 15 : index
    %c0_240 = arith.constant 0 : index
    %c0_241 = arith.constant 0 : index
    %546 = vector.load %arg8[%c15_239, %c0_240, %c0_241] : memref<16x8x256xf32, #tpu.memory_space<vmem>>, vector<1x8x256xf32>
    %547 = vector.shape_cast %546 : vector<1x8x256xf32> to vector<8x256xf32>
    %c0_242 = arith.constant 0 : index
    %c0_243 = arith.constant 0 : index
    %c0_244 = arith.constant 0 : index
    %548 = vector.load %arg8[%c0_242, %c0_243, %c0_244] : memref<16x8x256xf32, #tpu.memory_space<vmem>>, vector<1x8x256xf32>
    %549 = vector.shape_cast %548 : vector<1x8x256xf32> to vector<8x256xf32>
    %550 = arith.select %27, %547, %549 : vector<8x256xi1>, vector<8x256xf32>
    %551 = arith.truncf %537 : vector<8x64xf32> to vector<8x64xbf16>
    %cst_245 = arith.constant dense<0.000000e+00> : vector<8x256xf32>
    %552 = tpu.matmul %551, %33, %cst_245 {dimension_numbers = #tpu.dot_dimension_numbers<[1], [0], [0], [1], [0, 0, 1, 1], [], []>} : vector<8x64xbf16>, vector<64x256xbf16>, vector<8x256xf32> -> vector<8x256xf32>
    %553 = arith.addf %550, %552 : vector<8x256xf32>
    %cst_246 = arith.constant 5.000000e-01 : f32
    %554 = vector.broadcast %cst_246 : f32 to vector<8x256xf32>
    %555 = arith.mulf %554, %553 : vector<8x256xf32>
    %556 = arith.select %32, %553, %555 : vector<8x256xi1>, vector<8x256xf32>
    %557 = math.tanh %556 : vector<8x256xf32>
    %cst_247 = arith.constant 5.000000e-01 : f32
    %558 = vector.broadcast %cst_247 : f32 to vector<8x256xf32>
    %559 = arith.mulf %558, %557 : vector<8x256xf32>
    %cst_248 = arith.constant 5.000000e-01 : f32
    %560 = vector.broadcast %cst_248 : f32 to vector<8x256xf32>
    %561 = arith.addf %559, %560 : vector<8x256xf32>
    %562 = arith.select %32, %557, %561 : vector<8x256xi1>, vector<8x256xf32>
    %563 = vector.extract_strided_slice %562 {offsets = [0, 0], sizes = [8, 64], strides = [1, 1]} : vector<8x256xf32> to vector<8x64xf32>
    %564 = vector.extract_strided_slice %562 {offsets = [0, 64], sizes = [8, 64], strides = [1, 1]} : vector<8x256xf32> to vector<8x64xf32>
    %565 = vector.extract_strided_slice %562 {offsets = [0, 128], sizes = [8, 64], strides = [1, 1]} : vector<8x256xf32> to vector<8x64xf32>
    %566 = vector.extract_strided_slice %562 {offsets = [0, 192], sizes = [8, 64], strides = [1, 1]} : vector<8x256xf32> to vector<8x64xf32>
    %567 = arith.mulf %564, %535 : vector<8x64xf32>
    %568 = arith.mulf %563, %565 : vector<8x64xf32>
    %569 = arith.addf %567, %568 : vector<8x64xf32>
    %570 = math.tanh %569 : vector<8x64xf32>
    %571 = arith.mulf %566, %570 : vector<8x64xf32>
    %572 = vector.extract_strided_slice %571 {offsets = [0, 0], sizes = [8, 32], strides = [1, 1]} : vector<8x64xf32> to vector<8x32xf32>
    %c15_249 = arith.constant 15 : index
    %c0_250 = arith.constant 0 : index
    %c0_251 = arith.constant 0 : index
    %573 = vector.load %arg9[%c15_249, %c0_250, %c0_251] : memref<16x8x64xf32, #tpu.memory_space<vmem>>, vector<1x8x32xf32>
    %574 = vector.shape_cast %573 : vector<1x8x32xf32> to vector<8x32xf32>
    %575 = vector.shape_cast %572 : vector<8x32xf32> to vector<1x8x32xf32>
    tpu.vector_store %arg9[%c15_249, %c0_250, %c0_251], %575 {strides = array<i32>} : memref<16x8x64xf32, #tpu.memory_space<vmem>>, vector<1x8x32xf32>,
    %576 = vector.extract_strided_slice %571 {offsets = [0, 32], sizes = [8, 32], strides = [1, 1]} : vector<8x64xf32> to vector<8x32xf32>
    %c0_252 = arith.constant 0 : index
    %c0_253 = arith.constant 0 : index
    %c32_254 = arith.constant 32 : index
    %577 = vector.load %arg9[%c0_252, %c0_253, %c32_254] : memref<16x8x64xf32, #tpu.memory_space<vmem>>, vector<1x8x32xf32>
    %578 = vector.shape_cast %577 : vector<1x8x32xf32> to vector<8x32xf32>
    %579 = vector.shape_cast %576 : vector<8x32xf32> to vector<1x8x32xf32>
    tpu.vector_store %arg9[%c0_252, %c0_253, %c32_254], %579 {strides = array<i32>} : memref<16x8x64xf32, #tpu.memory_space<vmem>>, vector<1x8x32xf32>,
    %c0_255 = arith.constant 0 : index
    %c0_256 = arith.constant 0 : index
    %c0_257 = arith.constant 0 : index
    %580 = vector.load %arg9[%c0_255, %c0_256, %c0_257] : memref<16x8x64xf32, #tpu.memory_space<vmem>>, vector<16x8x64xf32>
    %581 = vector.shape_cast %580 : vector<16x8x64xf32> to vector<128x64xf32>
    %582 = arith.truncf %581 : vector<128x64xf32> to vector<128x64xbf16>
    %c0_258 = arith.constant 0 : index
    %c0_259 = arith.constant 0 : index
    %583 = vector.load %arg5[%c0_258, %c0_259] : memref<64x32xbf16, #tpu.memory_space<vmem>>, vector<64x32xbf16>
    %cst_260 = arith.constant dense<0.000000e+00> : vector<128x32xf32>
    %584 = tpu.matmul %582, %583, %cst_260 {dimension_numbers = #tpu.dot_dimension_numbers<[1], [0], [0], [1], [0, 0, 1, 1], [], []>} : vector<128x64xbf16>, vector<64x32xbf16>, vector<128x32xf32> -> vector<128x32xf32>
    %c0_261 = arith.constant 0 : index
    %c0_262 = arith.constant 0 : index
    %585 = vector.load %arg6[%c0_261, %c0_262] : memref<1x32xf32, #tpu.memory_space<vmem>>, vector<1x32xf32>
    %586 = vector.broadcast %585 : vector<1x32xf32> to vector<128x32xf32>
    %587 = arith.addf %584, %586 : vector<128x32xf32>
    %c0_263 = arith.constant 0 : index
    %c0_264 = arith.constant 0 : index
    %588 = vector.load %arg7[%c0_263, %c0_264] : memref<128x32xf32, #tpu.memory_space<vmem>>, vector<128x32xf32>
    tpu.vector_store %arg7[%c0_263, %c0_264], %587 {strides = array<i32>} : memref<128x32xf32, #tpu.memory_space<vmem>>, vector<128x32xf32>,
    return
  }
  func.func @transform_0(%arg0: i32) -> (i32, i32) {
    %c0_i32 = arith.constant 0 : i32
    %c0_i32_0 = arith.constant 0 : i32
    %c0_i32_1 = arith.constant 0 : i32
    return %c0_i32, %c0_i32_0 : i32, i32
  }
  func.func @transform_1(%arg0: i32) -> (i32, i32) {
    %c0_i32 = arith.constant 0 : i32
    %c0_i32_0 = arith.constant 0 : i32
    %c0_i32_1 = arith.constant 0 : i32
    return %c0_i32, %c0_i32_0 : i32, i32
  }
  func.func @transform_2(%arg0: i32) -> (i32, i32) {
    %c0_i32 = arith.constant 0 : i32
    %c0_i32_0 = arith.constant 0 : i32
    %c0_i32_1 = arith.constant 0 : i32
    return %c0_i32, %c0_i32_0 : i32, i32
  }
  func.func @transform_3(%arg0: i32) -> (i32, i32) {
    %c0_i32 = arith.constant 0 : i32
    %c0_i32_0 = arith.constant 0 : i32
    %c0_i32_1 = arith.constant 0 : i32
    return %c0_i32, %c0_i32_0 : i32, i32
  }
  func.func @transform_4(%arg0: i32) -> (i32, i32) {
    %c0_i32 = arith.constant 0 : i32
    %c0_i32_0 = arith.constant 0 : i32
    %c0_i32_1 = arith.constant 0 : i32
    return %c0_i32, %c0_i32_0 : i32, i32
  }
  func.func @transform_5(%arg0: i32) -> (i32, i32) {
    %c0_i32 = arith.constant 0 : i32
    %c0_i32_0 = arith.constant 0 : i32
    %c0_i32_1 = arith.constant 0 : i32
    return %c0_i32, %c0_i32_0 : i32, i32
  }
  func.func @transform_6(%arg0: i32) -> (i32, i32) {
    %c0_i32 = arith.constant 0 : i32
    %c0_i32_0 = arith.constant 0 : i32
    %c0_i32_1 = arith.constant 0 : i32
    return %c0_i32, %c0_i32_0 : i32, i32
  }
}

</mosaic_0001>

<bundles_post_ra>
// kernel: row_encoder_forward.1
= control target key start
LH: loop header
LB: loop body
LE: loop exit
PB: predicated region body
PF: predicated region fallthrough
CT: control target
= control target key end

     0   :  { %v3145_v1 = vmov 0   ;;  %vm84_vm0 = vcmask 261120   ;;  %v54_v25 = vlaneseq  ;;  %vm344_vm4 = vcmask 523264   ;;  %s3138_s1 = inlined_call_operand.vmem [shape: bf16[32,256], index: 1, kind: input, shape index: {}]   ;;  %s3139_s0 = inlined_call_operand.vmem [shape: f32[128,32], index: 0, kind: input, shape index: {}]   ;;  %s3140_s3 = inlined_call_operand.vmem [shape: bf16[64,256], index: 3, kind: input, shape index: {}]   ;;  %s3141_s2 = inlined_call_operand.vmem [shape: f32[1,256], index: 2, kind: input, shape index: {}]   ;;  %s3142_s4 = inlined_call_operand.vmem [shape: bf16[64,32], index: 4, kind: input, shape index: {}]   ;;  %s3143_s5 = inlined_call_operand.vmem [shape: f32[1,32], index: 5, kind: input, shape index: {}]   ;;  %s3144_s6 = inlined_call_operand.vmem [shape: f32[128,32], index: 6, kind: output, shape index: {}]  }
   0x1   :  { %v1987_v0 = vld [vmem:[%s3138_s1 + $0x4] ss:$8 sps:$4 sm:$0xff]   ;;  %141 = vmatprep.mubr.bf16.mxu0 %v3145_v1  ;;  %201 = vmatprep.mubr.bf16.mxu1 %v3145_v1  ;;  %v1989_v2 = vld [vmem:[%s3138_s1] ss:$8 sps:$4 sm:$0xff]   ;;  %v1990_v3 = vld [vmem:[%s3138_s1 + $0x14] ss:$8 sps:$4 sm:$0xff]  }
   0x2   :  { %109 = vmatprep.subr.bf16.mxu0 %v1987_v0  ;;  %1981 = vmatprep.subr.bf16.mxu1 %v1987_v0  ;;  %v1992_v4 = vld [vmem:[%s3138_s1 + $0x10] ss:$8 sps:$4 sm:$0xff]   ;;  %v24_v5 = vld [vmem:[%s3139_s0] sm:$0xff]  ;;  %v25_v6 = vld [vmem:[%s3139_s0 + $0x8] sm:$0xff]  ;;  %v55_v26 = vshrl.u32 %v54_v25, 7  ;;  %v255_v27 = vand.u32 127, %v54_v25 }
   0x3   :  { %110 = vmatpush1.bf16.msra.mxu0 %v1989_v2  ;;  %1983 = vmatpush1.bf16.msra.mxu1 %v1989_v2  ;;  %v36_v7 = vld [vmem:[%s3139_s0 + $0x60] sm:$0xff]  ;;  %v37_v8 = vld [vmem:[%s3139_s0 + $0x68] sm:$0xff]  ;;  %v40_v10 = vpack.c.bf16 %v25_v6, %v24_v5  ;;  %v2190_v13 = vld [vmem:[%s3140_s3 + $0x14] ss:$8 sps:$4 sm:$0xff]   ;;  %vm418_vm5 = vcmask 523520  }
   0x4   :  { %111 = vmatprep.subr.bf16.mxu0 %v1990_v3  ;;  %1982 = vmatprep.subr.bf16.mxu1 %v1990_v3  ;;  %v2179_v9 = vld [vmem:[%s3140_s3 + $0x4] ss:$8 sps:$4 sm:$0xff]   ;;  %v46_v11 = vpack.c.bf16 %v37_v8, %v36_v7  ;;  %v2184_v12 = vld [vmem:[%s3140_s3] ss:$8 sps:$4 sm:$0xff]   ;;  %v2198_v14 = vld [vmem:[%s3140_s3 + $0x10] ss:$8 sps:$4 sm:$0xff]  }
   0x5   :  { %v26_v15 = vld [vmem:[%s3139_s0 + $0x10] sm:$0xff]  ;;  %v27_v16 = vld [vmem:[%s3139_s0 + $0x18] sm:$0xff]  ;;  %v2219_v19 = vld [vmem:[%s3140_s3 + $0x24] ss:$8 sps:$4 sm:$0xff]   ;;  %v56_v28 = vsub.s32 0, %v55_v26  ;;  %v2264_v31 = vadd.s32 128, %v255_v27 }
   0x6   :  { %v38_v17 = vld [vmem:[%s3139_s0 + $0x70] sm:$0xff]  ;;  %v39_v18 = vld [vmem:[%s3139_s0 + $0x78] sm:$0xff]  ;;  %v41_v20 = vpack.c.bf16 %v27_v16, %v26_v15  ;;  %v2227_v22 = vld [vmem:[%s3140_s3 + $0x20] ss:$8 sps:$4 sm:$0xff]   ;;  %v60_v33 = vsub.s32 1, %v55_v26  ;;  %v261_v40 = vand.u32 63, %v255_v27 }
   0x7   :  { %112 = vmatpush1.bf16.msra.mxu0 %v1992_v4  ;;  %1984 = vmatpush1.bf16.msra.mxu1 %v1992_v4  ;;  %v47_v21 = vpack.c.bf16 %v39_v18, %v38_v17  ;;  %v2233_v23 = vld [vmem:[%s3140_s3 + $0x34] ss:$8 sps:$4 sm:$0xff]   ;;  %v2242_v24 = vld [vmem:[%s3140_s3 + $0x30] ss:$8 sps:$4 sm:$0xff]   ;;  %v52_v32 = vld [vmem:[%s3141_s2] sm:$0x3] }
   0x8   :  { %348 = vmatprep.subr.bf16.mxu1 %v2179_v9  ;;  %696 = vmatprep.subr.bf16.mxu0 %v2179_v9  ;;  %v2269_v41 = vrot.slane %v52_v32, %v56_v28  ;;  %v268_v42 = vand.u32 63, %v2264_v31  ;;  %v2272_v43 = vrot.slane %v52_v32, %v60_v33  ;;  %vm2277_vm1 = vcmp.lt.s32.totalorder %v261_v40, 32  ;;  %s2114_s2 = smov 64  }
   0x9   :  { %vm286_vm3 = vcmp.lt.s32.totalorder %v2264_v31, 192  ;;  %v2006_v31 = vld [vmem:[%s3142_s4 + $0x8] sm:$0xff]  }
   0xa   :  { %1901 = vmatmul.mubr.msk.bf16.vlgmr.msra.gmra.mrb[0].mxu0 %vm84_vm0, %v40_v10  ;;  %1907 = vmatmul.mubr.msk.bf16.vlgmr.msra.gmra.mrb[0].mxu1 %vm84_vm0, %v46_v11  ;;  %vm2290_vm2 = vcmp.lt.s32.totalorder %v268_v42, 32 }
   0xb   :  { %349 = vmatpush1.bf16.msra.mxu1 %v2184_v12  ;;  %151 = vmatprep.mubr.bf16.mxu0 %v3145_v1 }
   0xc   :  { %350 = vmatprep.subr.bf16.mxu1 %v2190_v13  ;;  %211 = vmatprep.mubr.bf16.mxu1 %v3145_v1 }
   0xd   :  { %697 = vmatpush1.bf16.msra.mxu0 %v2184_v12 }
   0xe   :  { %698 = vmatprep.subr.bf16.mxu0 %v2190_v13 }
   0xf   :  { %351 = vmatpush1.bf16.msra.mxu1 %v2198_v14 }
  0x10   :  { %352 = vmatprep.subr.bf16.mxu1 %v2219_v19 }
  0x11   :  { %699 = vmatpush1.bf16.msra.mxu0 %v2198_v14 }
  0x12   :  { %1902 = vmatmul.mubr.msk.bf16.gmra.mrb[4].mxu0 %vm84_vm0, %v41_v20  ;;  %1908 = vmatmul.mubr.msk.bf16.gmra.mrb[4].mxu1 %vm84_vm0, %v47_v21 }
  0x13   :  { %353 = vmatpush1.bf16.msra.mxu1 %v2227_v22  ;;  %380 = vmatprep.mubr.bf16.mxu1 %v3145_v1 }
  0x14   :  { %354 = vmatprep.subr.bf16.mxu1 %v2233_v23  ;;  %161 = vmatprep.mubr.bf16.mxu0 %v3145_v1 }
  0x15   :  { %700 = vmatprep.subr.bf16.mxu0 %v2219_v19 }
  0x16   :  { %701 = vmatpush1.bf16.msra.mxu0 %v2227_v22 }
  0x17   :  { %355 = vmatpush1.bf16.msra.mxu1 %v2242_v24  ;;  %702 = vmatprep.subr.bf16.mxu0 %v2233_v23 }
  0x18   :  { %435 = vmatprep.subr.bf16.mxu1 %v2179_v9 }
  0x1a   :  { %381 = vmatmul.mubr.bf16.vlgmr.msra.gmra.mrb[8].mxu1 %v3145_v1  ;;  %703 = vmatpush1.bf16.msra.mxu0 %v2242_v24 }
  0x1b   :  { %436 = vmatpush1.bf16.msra.mxu1 %v2184_v12  ;;  %467 = vmatprep.mubr.bf16.mxu1 %v3145_v1 }
  0x1c   :  { %437 = vmatprep.subr.bf16.mxu1 %v2190_v13  ;;  %870 = vmatprep.subr.bf16.mxu0 %v2179_v9 }
  0x1f   :  { %438 = vmatpush1.bf16.msra.mxu1 %v2198_v14 }
  0x20   :  { %439 = vmatprep.subr.bf16.mxu1 %v2219_v19 }
  0x23   :  { %440 = vmatpush1.bf16.msra.mxu1 %v2227_v22 }
  0x24   :  { %441 = vmatprep.subr.bf16.mxu1 %v2233_v23 }
  0x27   :  { %442 = vmatpush1.bf16.msra.mxu1 %v2242_v24 }
  0x28   :  { %522 = vmatprep.subr.bf16.mxu1 %v2179_v9 }
  0xdd   :  { %v203_v29 = vpop.f32.mrb[0].mxu1  ;;  %v143_v30 = vpop.f32.mrb[0].mxu0 }
  0xde   :  { %v205_v34 = vpop.f32.mrb[1].mxu1  ;;  %v145_v35 = vpop.f32.mrb[1].mxu0  ;;  %v2282_v46 = vadd.f32 %v203_v29, %v2269_v41  ;;  %v2285_v47 = vadd.f32 %v143_v30, %v2269_v41 }
  0xdf   :  { %v207_v36 = vpop.f32.mrb[2].mxu1  ;;  %v147_v37 = vpop.f32.mrb[2].mxu0  ;;  %v2295_v52 = vadd.f32 %v205_v34, %v2272_v43  ;;  %v2310_v59 = vadd.f32 %v145_v35, %v2272_v43 }
  0xe0   :  { %v209_v38 = vpop.f32.mrb[3].mxu1  ;;  %v149_v39 = vpop.f32.mrb[3].mxu0  ;;  %v2275_v44 = vadd.f32 %v147_v37, %v2269_v41  ;;  %v2298_v53 = vadd.f32 %v207_v36, %v2269_v41 }
  0xe1   :  { %v2288_v48 = vadd.f32 %v149_v39, %v2272_v43  ;;  %v2307_v58 = vadd.f32 %v209_v38, %v2272_v43  ;;  %3156 = vst [vmem:[#allocation4_spill] sm:$0xff] %v2310_v59 }
  0xe5   :  { %v153_v49 = vpop.f32.mrb[4].mxu0  ;;  %v213_v50 = vpop.f32.mrb[4].mxu1 }
  0xe6   :  { %v2301_v54 = vadd.f32 %v153_v49, %v2269_v41  ;;  %v2304_v55 = vadd.f32 %v213_v50, %v2269_v41  ;;  %v155_v56 = vpop.f32.mrb[5].mxu0  ;;  %v215_v57 = vpop.f32.mrb[5].mxu1 }
  0xe7   :  { %v2313_v60 = vadd.f32 %v155_v56, %v2272_v43  ;;  %v2316_v61 = vadd.f32 %v215_v57, %v2272_v43  ;;  %v157_v62 = vpop.f32.mrb[6].mxu0  ;;  %v217_v63 = vpop.f32.mrb[6].mxu1 }
  0xe8   :  { %v2319_v0 = vadd.f32 %v157_v62, %v2269_v41  ;;  %v2322_v2 = vadd.f32 %v217_v63, %v2269_v41  ;;  %v159_v3 = vpop.f32.mrb[7].mxu0  ;;  %v219_v4 = vpop.f32.mrb[7].mxu1  ;;  %v426_v5 = vsel %vm2277_vm1, %v2275_v44, %v2304_v55  ;;  %v513_v6 = vsel %vm2277_vm1, %v2301_v54, %v2298_v53 }
  0xe9   :  { %v2333_v7 = vadd.f32 %v159_v3, %v2272_v43  ;;  %v2336_v8 = vadd.f32 %v219_v4, %v2272_v43  ;;  %v427_v10 = vsel %vm2290_vm2, %v2288_v48, %v2316_v61  ;;  %v514_v11 = vsel %vm2290_vm2, %v2313_v60, %v2307_v58 }
  0xea   :  { %v302_v15 = vsel %vm2277_vm1, %v2285_v47, %v2322_v2  ;;  %v600_v16 = vsel %vm2277_vm1, %v2319_v0, %v2282_v46 }
  0xeb   :  { %3157 = vst [vmem:[#allocation5_spill] sm:$0xff] %v2336_v8  ;;  %v303_v20 = vsel %vm2290_vm2, %v2310_v59, %v2336_v8  ;;  %v601_v21 = vsel %vm2290_vm2, %v2333_v7, %v2295_v52 }
  0xed   :  { %v382_v32 = vpop.f32.mrb[8].mxu1 }
  0xee   :  { %v389_v33 = vadd.f32 %v382_v32, %v302_v15  ;;  %v384_v34 = vpop.f32.mrb[9].mxu1 }
  0xef   :  { %v390_v35 = vadd.f32 %v384_v34, %v303_v20  ;;  %v386_v36 = vpop.f32.mrb[10].mxu1 }
  0xf0   :  { %v391_v37 = vmul.f32 0.5, %v389_v33  ;;  %v387_v38 = vpop.f32.mrb[11].mxu1 }
  0xf1   :  { %v392_v39 = vmul.f32 0.5, %v390_v35 }
  0xf2   :  { %2009 = vtanh.f32 %v391_v37 }
  0xf3   :  { %v394_v40 = vsel %vm286_vm3, %v390_v35, %v392_v39 }
  0xf4   :  { %2011 = vtanh.f32 %v394_v40 }
  0xfc   :  { %v2010_v42 = vpop.eup %2009 }
  0xfd   :  { %v397_v50 = vmul.f32 0.5, %v2010_v42 }
  0xfe   :  { %v2012_v49 = vpop.eup %2011 }
  0xff   :  { %v398_v56 = vmul.f32 0.5, %v2012_v49  ;;  %v399_v62 = vadd.f32 0.5, %v397_v50 }
 0x101   :  { %v400_v57 = vadd.f32 0.5, %v398_v56  ;;  %v403_v4 = vmul.f32 0.0, %v399_v62 }
 0x103   :  { %v402_v63 = vsel %vm286_vm3, %v2012_v49, %v400_v57 }
 0x104   :  { %v404_v3 = vmul.f32 %v402_v63, %v399_v62 }
 0x106   :  { %406 = vrot.lane.b32.xlu0 %v404_v3, %s2114_s2 }
 0x178   :  { %v407_v15 = vpop.permute.xlu0 %406 }
 0x179   :  { %v409_v20 = vadd.f32 %v407_v15, %v403_v4 }
 0x17b   :  { %2013 = vtanh.f32 %v409_v20 }
 0x185   :  { %v2014_v32 = vpop.eup %2013 }
 0x186   :  { %v2400_v33 = vmul.f32 %v2014_v32, %v402_v63 }
 0x188   :  { %v428_v34 = vpack.c.bf16 %v2400_v33, %v2400_v33 }
 0x18a   :  { %430 = vrot.lane.b32.xlu0 %v428_v34, %s2114_s2 }
 0x1fc   :  { %v431_v35 = vpop.permute.xlu0 %430 }
 0x1fd   :  { %1917 = vmatmul.mubr.msk.bf16.vlgmr.msra.gmra.mrb[12].mxu1 %vm344_vm4, %v431_v35 }
 0x1fe   :  { %523 = vmatpush1.bf16.msra.mxu1 %v2184_v12  ;;  %554 = vmatprep.mubr.bf16.mxu1 %v3145_v1 }
 0x1ff   :  { %524 = vmatprep.subr.bf16.mxu1 %v2190_v13 }
 0x202   :  { %525 = vmatpush1.bf16.msra.mxu1 %v2198_v14 }
 0x203   :  { %526 = vmatprep.subr.bf16.mxu1 %v2219_v19 }
 0x206   :  { %527 = vmatpush1.bf16.msra.mxu1 %v2227_v22 }
 0x207   :  { %528 = vmatprep.subr.bf16.mxu1 %v2233_v23 }
 0x20a   :  { %529 = vmatpush1.bf16.msra.mxu1 %v2242_v24 }
 0x20b   :  { %609 = vmatprep.subr.bf16.mxu1 %v2179_v9 }
 0x2d0   :  { %v469_v36 = vpop.f32.mrb[12].mxu1 }
 0x2d1   :  { %v476_v37 = vadd.f32 %v469_v36, %v426_v5  ;;  %v471_v38 = vpop.f32.mrb[13].mxu1 }
 0x2d2   :  { %v477_v39 = vadd.f32 %v471_v38, %v427_v10  ;;  %v473_v40 = vpop.f32.mrb[14].mxu1 }
 0x2d3   :  { %v478_v42 = vmul.f32 0.5, %v476_v37  ;;  %v474_v49 = vpop.f32.mrb[15].mxu1 }
 0x2d4   :  { %v479_v50 = vmul.f32 0.5, %v477_v39 }
 0x2d5   :  { %2015 = vtanh.f32 %v478_v42 }
 0x2d6   :  { %v481_v56 = vsel %vm286_vm3, %v477_v39, %v479_v50 }
 0x2d7   :  { %2017 = vtanh.f32 %v481_v56 }
 0x2df   :  { %v2016_v57 = vpop.eup %2015 }
 0x2e0   :  { %v484_v63 = vmul.f32 0.5, %v2016_v57 }
 0x2e1   :  { %v2018_v62 = vpop.eup %2017 }
 0x2e2   :  { %v485_v3 = vmul.f32 0.5, %v2018_v62  ;;  %v486_v15 = vadd.f32 0.5, %v484_v63 }
 0x2e4   :  { %v487_v4 = vadd.f32 0.5, %v485_v3  ;;  %v490_v10 = vmul.f32 %v486_v15, %v409_v20 }
 0x2e6   :  { %v489_v5 = vsel %vm286_vm3, %v2018_v62, %v487_v4 }
 0x2e7   :  { %v491_v32 = vmul.f32 %v489_v5, %v486_v15 }
 0x2e9   :  { %493 = vrot.lane.b32.xlu1 %v491_v32, %s2114_s2 }
 0x35b   :  { %v494_v34 = vpop.permute.xlu1 %493 }
 0x35c   :  { %v496_v35 = vadd.f32 %v494_v34, %v490_v10 }
 0x35e   :  { %2019 = vtanh.f32 %v496_v35 }
 0x368   :  { %v2020_v36 = vpop.eup %2019 }
 0x369   :  { %v2420_v37 = vmul.f32 %v2020_v36, %v489_v5 }
 0x36b   :  { %3158 = vst [vmem:[#allocation6_spill] sm:$0xff] %v2420_v37  ;;  %v515_v38 = vpack.c.bf16 %v2420_v37, %v2420_v37 }
 0x36d   :  { %517 = vrot.lane.b32.xlu1 %v515_v38, %s2114_s2 }
 0x3df   :  { %v518_v39 = vpop.permute.xlu1 %517 }
 0x3e0   :  { %1918 = vmatmul.mubr.msk.bf16.vlgmr.msra.gmra.mrb[16].mxu1 %vm344_vm4, %v518_v39 }
 0x3e1   :  { %610 = vmatpush1.bf16.msra.mxu1 %v2184_v12  ;;  %641 = vmatprep.mubr.bf16.mxu1 %v3145_v1 }
 0x3e2   :  { %611 = vmatprep.subr.bf16.mxu1 %v2190_v13 }
 0x3e5   :  { %612 = vmatpush1.bf16.msra.mxu1 %v2198_v14 }
 0x3e6   :  { %613 = vmatprep.subr.bf16.mxu1 %v2219_v19 }
 0x3e9   :  { %614 = vmatpush1.bf16.msra.mxu1 %v2227_v22 }
 0x3ea   :  { %615 = vmatprep.subr.bf16.mxu1 %v2233_v23 }
 0x3ed   :  { %616 = vmatpush1.bf16.msra.mxu1 %v2242_v24 }
 0x3ee   :  { %783 = vmatprep.subr.bf16.mxu1 %v2179_v9 }
 0x4b3   :  { %v556_v20 = vpop.f32.mrb[16].mxu1 }
 0x4b4   :  { %v563_v40 = vadd.f32 %v556_v20, %v513_v6  ;;  %v558_v42 = vpop.f32.mrb[17].mxu1 }
 0x4b5   :  { %v564_v49 = vadd.f32 %v558_v42, %v514_v11  ;;  %v560_v50 = vpop.f32.mrb[18].mxu1 }
 0x4b6   :  { %v565_v56 = vmul.f32 0.5, %v563_v40  ;;  %v561_v57 = vpop.f32.mrb[19].mxu1 }
 0x4b7   :  { %v566_v62 = vmul.f32 0.5, %v564_v49 }
 0x4b8   :  { %2021 = vtanh.f32 %v565_v56 }
 0x4b9   :  { %v568_v63 = vsel %vm286_vm3, %v564_v49, %v566_v62 }
 0x4ba   :  { %2023 = vtanh.f32 %v568_v63 }
 0x4c2   :  { %v2022_v3 = vpop.eup %2021 }
 0x4c3   :  { %v571_v15 = vmul.f32 0.5, %v2022_v3 }
 0x4c4   :  { %v2024_v4 = vpop.eup %2023 }
 0x4c5   :  { %v572_v6 = vmul.f32 0.5, %v2024_v4  ;;  %v573_v32 = vadd.f32 0.5, %v571_v15 }
 0x4c7   :  { %v574_v5 = vadd.f32 0.5, %v572_v6  ;;  %v577_v11 = vmul.f32 %v573_v32, %v496_v35 }
 0x4c9   :  { %v576_v10 = vsel %vm286_vm3, %v2024_v4, %v574_v5 }
 0x4ca   :  { %v578_v34 = vmul.f32 %v576_v10, %v573_v32 }
 0x4cc   :  { %580 = vrot.lane.b32.xlu0 %v578_v34, %s2114_s2 }
 0x53e   :  { %v581_v36 = vpop.permute.xlu0 %580 }
 0x53f   :  { %v583_v38 = vadd.f32 %v581_v36, %v577_v11  ;;  %v29_v36 = vld [vmem:[%s3139_s0 + $0x28] sm:$0xff] }
 0x541   :  { %2025 = vtanh.f32 %v583_v38 }
 0x54b   :  { %v2026_v39 = vpop.eup %2025 }
 0x54c   :  { %v2450_v20 = vmul.f32 %v2026_v39, %v576_v10 }
 0x54e   :  { %v602_v40 = vpack.c.bf16 %v2450_v20, %v2450_v20 }
 0x550   :  { %604 = vrot.lane.b32.xlu1 %v602_v40, %s2114_s2  ;;  %v30_v40 = vld [vmem:[%s3139_s0 + $0x30] sm:$0xff] }
 0x5c2   :  { %v605_v42 = vpop.permute.xlu1 %604 }
 0x5c3   :  { %1919 = vmatmul.mubr.msk.bf16.vlgmr.msra.gmra.mrb[20].mxu1 %vm344_vm4, %v605_v42  ;;  %v31_v42 = vld [vmem:[%s3139_s0 + $0x38] sm:$0xff] }
 0x5c4   :  { %784 = vmatpush1.bf16.msra.mxu1 %v2184_v12  ;;  %815 = vmatprep.mubr.bf16.mxu1 %v3145_v1 }
 0x5c5   :  { %785 = vmatprep.subr.bf16.mxu1 %v2190_v13 }
 0x5c8   :  { %786 = vmatpush1.bf16.msra.mxu1 %v2198_v14 }
 0x5c9   :  { %787 = vmatprep.subr.bf16.mxu1 %v2219_v19 }
 0x5cc   :  { %788 = vmatpush1.bf16.msra.mxu1 %v2227_v22 }
 0x5cd   :  { %789 = vmatprep.subr.bf16.mxu1 %v2233_v23 }
 0x5d0   :  { %790 = vmatpush1.bf16.msra.mxu1 %v2242_v24 }
 0x5d1   :  { %957 = vmatprep.subr.bf16.mxu1 %v2179_v9 }
 0x696   :  { %v643_v35 = vpop.f32.mrb[20].mxu1 }
 0x697   :  { %v650_v49 = vadd.f32 %v643_v35, %v600_v16  ;;  %v645_v50 = vpop.f32.mrb[21].mxu1  ;;  %v43_v35 = vpack.c.bf16 %v31_v42, %v30_v40 }
 0x698   :  { %v651_v56 = vadd.f32 %v645_v50, %v601_v21  ;;  %v647_v57 = vpop.f32.mrb[22].mxu1  ;;  %v28_v21 = vld [vmem:[%s3139_s0 + $0x20] sm:$0xff]  ;;  %v33_v50 = vld [vmem:[%s3139_s0 + $0x48] sm:$0xff] }
 0x699   :  { %v652_v62 = vmul.f32 0.5, %v650_v49  ;;  %v648_v63 = vpop.f32.mrb[23].mxu1  ;;  %v42_v39 = vpack.c.bf16 %v29_v36, %v28_v21  ;;  %v32_v49 = vld [vmem:[%s3139_s0 + $0x40] sm:$0xff]  ;;  %v34_v57 = vld [vmem:[%s3139_s0 + $0x50] sm:$0xff] }
 0x69a   :  { %v653_v3 = vmul.f32 0.5, %v651_v56 }
 0x69b   :  { %2027 = vtanh.f32 %v652_v62  ;;  %1903 = vmatmul.mubr.msk.bf16.gmra.mrb[8].mxu0 %vm84_vm0, %v42_v39  ;;  %v35_v62 = vld [vmem:[%s3139_s0 + $0x58] sm:$0xff] }
 0x69c   :  { %v655_v4 = vsel %vm286_vm3, %v651_v56, %v653_v3  ;;  %171 = vmatprep.mubr.bf16.mxu0 %v3145_v1  ;;  %v44_v56 = vpack.c.bf16 %v33_v50, %v32_v49  ;;  %v45_v63 = vpack.c.bf16 %v35_v62, %v34_v57 }
 0x69d   :  { %2029 = vtanh.f32 %v655_v4 }
 0x6a3   :  { %1904 = vmatmul.mubr.msk.bf16.gmra.mrb[12].mxu0 %vm84_vm0, %v43_v35 }
 0x6a4   :  { %181 = vmatprep.mubr.bf16.mxu0 %v3145_v1 }
 0x6a5   :  { %v2028_v15 = vpop.eup %2027 }
 0x6a6   :  { %v658_v5 = vmul.f32 0.5, %v2028_v15 }
 0x6a7   :  { %v2030_v6 = vpop.eup %2029 }
 0x6a8   :  { %v659_v16 = vmul.f32 0.5, %v2030_v6  ;;  %v660_v10 = vadd.f32 0.5, %v658_v5 }
 0x6aa   :  { %v661_v32 = vadd.f32 0.5, %v659_v16  ;;  %v664_v3 = vmul.f32 %v660_v10, %v583_v38 }
 0x6ab   :  { %1905 = vmatmul.mubr.msk.bf16.gmra.mrb[16].mxu0 %vm84_vm0, %v44_v56 }
 0x6ac   :  { %v663_v34 = vsel %vm286_vm3, %v2030_v6, %v661_v32  ;;  %191 = vmatprep.mubr.bf16.mxu0 %v3145_v1 }
 0x6ad   :  { %v665_v11 = vmul.f32 %v663_v34, %v660_v10 }
 0x6af   :  { %667 = vrot.lane.b32.xlu0 %v665_v11, %s2114_s2 }
 0x6b3   :  { %1906 = vmatmul.mubr.msk.bf16.gmra.mrb[20].mxu0 %vm84_vm0, %v45_v63 }
 0x6b4   :  { %728 = vmatprep.mubr.bf16.mxu0 %v3145_v1 }
 0x721   :  { %v668_v4 = vpop.permute.xlu0 %667 }
 0x722   :  { %v2512_v15 = vadd.f32 %v668_v4, %v664_v3 }
 0x724   :  { %2031 = vtanh.f32 %v2512_v15 }
 0x72e   :  { %v2032_v6 = vpop.eup %2031 }
 0x72f   :  { %v2515_v5 = vmul.f32 %v2032_v6, %v663_v34 }
 0x731   :  { %3159 = vst [vmem:[#allocation7_spill] sm:$0xff] %v2515_v5  ;;  %v689_v16 = vpack.c.bf16 %v2515_v5, %v2515_v5 }
 0x733   :  { %691 = vrot.lane.b32.xlu1 %v689_v16, %s2114_s2 }
 0x76e   :  { %v163_v32 = vpop.f32.mrb[8].mxu0 }
 0x76f   :  { %v165_v11 = vpop.f32.mrb[9].mxu0  ;;  %v2521_v34 = vadd.f32 %v163_v32, %v2269_v41 }
 0x770   :  { %v167_v21 = vpop.f32.mrb[10].mxu0  ;;  %v2541_v16 = vadd.f32 %v165_v11, %v2272_v43 }
 0x771   :  { %v169_v36 = vpop.f32.mrb[11].mxu0  ;;  %v2544_v32 = vadd.f32 %v167_v21, %v2269_v41 }
 0x776   :  { %v173_v39 = vpop.f32.mrb[12].mxu0 }
 0x777   :  { %v175_v40 = vpop.f32.mrb[13].mxu0  ;;  %v2587_v27 = vadd.f32 %v173_v39, %v2269_v41 }
 0x778   :  { %v177_v38 = vpop.f32.mrb[14].mxu0  ;;  %v2590_v26 = vadd.f32 %v175_v40, %v2272_v43 }
 0x779   :  { %v179_v10 = vpop.f32.mrb[15].mxu0  ;;  %v2593_v18 = vadd.f32 %v177_v38, %v2269_v41 }
 0x77a   :  { %v2596_v25 = vadd.f32 %v179_v10, %v2272_v43 }
 0x77e   :  { %v183_v42 = vpop.f32.mrb[16].mxu0 }
 0x77f   :  { %v185_v35 = vpop.f32.mrb[17].mxu0  ;;  %v2599_v17 = vadd.f32 %v183_v42, %v2269_v41 }
 0x780   :  { %v187_v49 = vpop.f32.mrb[18].mxu0 }
 0x781   :  { %v189_v50 = vpop.f32.mrb[19].mxu0  ;;  %v2605_v28 = vadd.f32 %v187_v49, %v2269_v41 }
 0x782   :  { %v2608_v39 = vadd.f32 %v189_v50, %v2272_v43 }
 0x786   :  { %v193_v56 = vpop.f32.mrb[20].mxu0 }
 0x787   :  { %v195_v57 = vpop.f32.mrb[21].mxu0 }
 0x788   :  { %v197_v62 = vpop.f32.mrb[22].mxu0  ;;  %v2553_v30 = vadd.f32 %v195_v57, %v2272_v43 }
 0x789   :  { %v2524_v63 = vadd.f32 %v197_v62, %v2269_v41  ;;  %v199_v3 = vpop.f32.mrb[23].mxu0  ;;  %v2547_v62 = vadd.f32 %v169_v36, %v2272_v43 }
 0x78a   :  { %v2556_v29 = vadd.f32 %v199_v3, %v2272_v43  ;;  %v2602_v3 = vadd.f32 %v185_v35, %v2272_v43 }
 0x78b   :  { %v687_v6 = vsel %vm2277_vm1, %v2521_v34, %v2524_v63 }
 0x78c   :  { %v688_v11 = vsel %vm2290_vm2, %v2541_v16, %v2556_v29 }
 0x7a5   :  { %v692_v4 = vpop.permute.xlu1 %691 }
 0x7a6   :  { %1920 = vmatmul.mubr.msk.bf16.vlgmr.msra.gmra.mrb[24].mxu0 %vm344_vm4, %v692_v4  ;;  %v2550_v4 = vadd.f32 %v193_v56, %v2269_v41 }
 0x7a7   :  { %871 = vmatpush1.bf16.msra.mxu0 %v2184_v12  ;;  %902 = vmatprep.mubr.bf16.mxu0 %v3145_v1 }
 0x7a8   :  { %872 = vmatprep.subr.bf16.mxu0 %v2190_v13  ;;  %v774_v21 = vsel %vm2277_vm1, %v2544_v32, %v2550_v4 }
 0x7ab   :  { %873 = vmatpush1.bf16.msra.mxu0 %v2198_v14 }
 0x7ac   :  { %874 = vmatprep.subr.bf16.mxu0 %v2219_v19 }
 0x7af   :  { %875 = vmatpush1.bf16.msra.mxu0 %v2227_v22 }
 0x7b0   :  { %876 = vmatprep.subr.bf16.mxu0 %v2233_v23 }
 0x7b3   :  { %877 = vmatpush1.bf16.msra.mxu0 %v2242_v24 }
 0x7b4   :  { %1042 = vmatprep.subr.bf16.mxu0 %v2179_v9 }
 0x879   :  { %v730_v50 = vpop.f32.mrb[24].mxu0 }
 0x87a   :  { %v737_v57 = vadd.f32 %v730_v50, %v687_v6  ;;  %v732_v56 = vpop.f32.mrb[25].mxu0 }
 0x87b   :  { %v738_v41 = vadd.f32 %v732_v56, %v688_v11  ;;  %v734_v43 = vpop.f32.mrb[26].mxu0 }
 0x87c   :  { %v739_v10 = vmul.f32 0.5, %v737_v57  ;;  %v735_v38 = vpop.f32.mrb[27].mxu0 }
 0x87d   :  { %v740_v40 = vmul.f32 0.5, %v738_v41 }
 0x87e   :  { %2033 = vtanh.f32 %v739_v10  ;;  %v3161_v10 = vsel %vm2290_vm2, %v2547_v62, %v2553_v30 }
 0x87f   :  { %v742_v42 = vsel %vm286_vm3, %v738_v41, %v740_v40 }
 0x880   :  { %2035 = vtanh.f32 %v742_v42 }
 0x888   :  { %v2034_v36 = vpop.eup %2033 }
 0x889   :  { %v745_v1 = vmul.f32 0.5, %v2034_v36 }
 0x88a   :  { %v2036_v35 = vpop.eup %2035 }
 0x88b   :  { %v746_v5 = vmul.f32 0.5, %v2036_v35  ;;  %v747_v59 = vadd.f32 0.5, %v745_v1 }
 0x88d   :  { %v748_v37 = vadd.f32 0.5, %v746_v5  ;;  %v751_v11 = vmul.f32 %v747_v59, %v2512_v15 }
 0x88f   :  { %v750_v6 = vsel %vm286_vm3, %v2036_v35, %v748_v37  ;;  %v3160_v37 = vmov 0  }
 0x890   :  { %v752_v50 = vmul.f32 %v750_v6, %v747_v59 }
 0x892   :  { %754 = vrot.lane.b32.xlu0 %v752_v50, %s2114_s2 }
 0x904   :  { %v755_v56 = vpop.permute.xlu0 %754 }
 0x905   :  { %v757_v57 = vadd.f32 %v755_v56, %v751_v11 }
 0x907   :  { %2037 = vtanh.f32 %v757_v57 }
 0x911   :  { %v2038_v38 = vpop.eup %2037 }
 0x912   :  { %v2648_v40 = vmul.f32 %v2038_v38, %v750_v6 }
 0x914   :  { %v776_v36 = vpack.c.bf16 %v2648_v40, %v2648_v40 }
 0x916   :  { %778 = vrot.lane.b32.xlu1 %v776_v36, %s2114_s2 }
 0x988   :  { %v779_v1 = vpop.permute.xlu1 %778 }
 0x989   :  { %1921 = vmatmul.mubr.msk.bf16.vlgmr.msra.gmra.mrb[24].mxu1 %vm344_vm4, %v779_v1 }
 0x98a   :  { %958 = vmatpush1.bf16.msra.mxu1 %v2184_v12  ;;  %989 = vmatprep.mubr.bf16.mxu1 %v3160_v37 }
 0x98b   :  { %959 = vmatprep.subr.bf16.mxu1 %v2190_v13 }
 0x98e   :  { %960 = vmatpush1.bf16.msra.mxu1 %v2198_v14 }
 0x98f   :  { %961 = vmatprep.subr.bf16.mxu1 %v2219_v19 }
 0x992   :  { %962 = vmatpush1.bf16.msra.mxu1 %v2227_v22 }
 0x993   :  { %963 = vmatprep.subr.bf16.mxu1 %v2233_v23 }
 0x996   :  { %964 = vmatpush1.bf16.msra.mxu1 %v2242_v24 }
 0x997   :  { %1125 = vmatprep.subr.bf16.mxu1 %v2179_v9 }
 0xa5c   :  { %v817_v59 = vpop.f32.mrb[24].mxu1 }
 0xa5d   :  { %v824_v15 = vadd.f32 %v817_v59, %v774_v21  ;;  %v819_v5 = vpop.f32.mrb[25].mxu1 }
 0xa5e   :  { %v825_v41 = vadd.f32 %v819_v5, %v3161_v10  ;;  %v821_v43 = vpop.f32.mrb[26].mxu1 }
 0xa5f   :  { %v826_v42 = vmul.f32 0.5, %v824_v15  ;;  %v822_v35 = vpop.f32.mrb[27].mxu1 }
 0xa60   :  { %v827_v6 = vmul.f32 0.5, %v825_v41 }
 0xa61   :  { %2039 = vtanh.f32 %v826_v42 }
 0xa62   :  { %v829_v50 = vsel %vm286_vm3, %v825_v41, %v827_v6 }
 0xa63   :  { %2041 = vtanh.f32 %v829_v50 }
 0xa6b   :  { %v2040_v11 = vpop.eup %2039 }
 0xa6c   :  { %v832_v38 = vmul.f32 0.5, %v2040_v11  ;;  %v3164_v11 = vsel %vm2290_vm2, %v2590_v26, %v2608_v39 }
 0xa6d   :  { %v2042_v56 = vpop.eup %2041 }
 0xa6e   :  { %v833_v21 = vmul.f32 0.5, %v2042_v56  ;;  %v834_v1 = vadd.f32 0.5, %v832_v38 }
 0xa70   :  { %v835_v36 = vadd.f32 0.5, %v833_v21  ;;  %v838_v15 = vmul.f32 %v834_v1, %v757_v57  ;;  %v3163_v57 = vsel %vm2277_vm1, %v2587_v27, %v2605_v28 }
 0xa72   :  { %v837_v59 = vsel %vm286_vm3, %v2042_v56, %v835_v36 }
 0xa73   :  { %v839_v49 = vmul.f32 %v837_v59, %v834_v1 }
 0xa75   :  { %841 = vrot.lane.b32.xlu0 %v839_v49, %s2114_s2 }
 0xae7   :  { %v842_v5 = vpop.permute.xlu0 %841 }
 0xae8   :  { %v844_v10 = vadd.f32 %v842_v5, %v838_v15 }
 0xaea   :  { %2043 = vtanh.f32 %v844_v10 }
 0xaf4   :  { %v2044_v43 = vpop.eup %2043 }
 0xaf5   :  { %v2673_v42 = vmul.f32 %v2044_v43, %v837_v59 }
 0xaf7   :  { %3162 = vst [vmem:[#allocation8_spill] sm:$0xff] %v2673_v42  ;;  %v863_v41 = vpack.c.bf16 %v2673_v42, %v2673_v42 }
 0xaf9   :  { %865 = vrot.lane.b32.xlu1 %v863_v41, %s2114_s2 }
 0xb6b   :  { %v866_v35 = vpop.permute.xlu1 %865 }
 0xb6c   :  { %1922 = vmatmul.mubr.msk.bf16.vlgmr.msra.gmra.mrb[28].mxu0 %vm344_vm4, %v866_v35 }
 0xb6d   :  { %1043 = vmatpush1.bf16.msra.mxu0 %v2184_v12  ;;  %1074 = vmatprep.mubr.bf16.mxu0 %v3160_v37 }
 0xb6e   :  { %1044 = vmatprep.subr.bf16.mxu0 %v2190_v13 }
 0xb71   :  { %1045 = vmatpush1.bf16.msra.mxu0 %v2198_v14 }
 0xb72   :  { %1046 = vmatprep.subr.bf16.mxu0 %v2219_v19 }
 0xb75   :  { %1047 = vmatpush1.bf16.msra.mxu0 %v2227_v22 }
 0xb76   :  { %1048 = vmatprep.subr.bf16.mxu0 %v2233_v23 }
 0xb79   :  { %1049 = vmatpush1.bf16.msra.mxu0 %v2242_v24 }
 0xb7a   :  { %1208 = vmatprep.subr.bf16.mxu0 %v2179_v9 }
 0xc3f   :  { %v904_v49 = vpop.f32.mrb[28].mxu0 }
 0xc40   :  { %v911_v6 = vadd.f32 %v904_v49, %v3163_v57  ;;  %v906_v50 = vpop.f32.mrb[29].mxu0 }
 0xc41   :  { %v912_v56 = vadd.f32 %v906_v50, %v3164_v11  ;;  %v908_v38 = vpop.f32.mrb[30].mxu0 }
 0xc42   :  { %v913_v21 = vmul.f32 0.5, %v911_v6  ;;  %v909_v36 = vpop.f32.mrb[31].mxu0 }
 0xc43   :  { %v914_v1 = vmul.f32 0.5, %v912_v56 }
 0xc44   :  { %2045 = vtanh.f32 %v913_v21 }
 0xc45   :  { %v916_v59 = vsel %vm286_vm3, %v912_v56, %v914_v1 }
 0xc46   :  { %2047 = vtanh.f32 %v916_v59 }
 0xc4e   :  { %v2046_v15 = vpop.eup %2045 }
 0xc4f   :  { %v919_v43 = vmul.f32 0.5, %v2046_v15  ;;  %v3166_v15 = vsel %vm2290_vm2, %v2596_v25, %v2602_v3 }
 0xc50   :  { %v2048_v5 = vpop.eup %2047 }
 0xc51   :  { %v920_v41 = vmul.f32 0.5, %v2048_v5  ;;  %v921_v49 = vadd.f32 0.5, %v919_v43 }
 0xc53   :  { %v922_v35 = vadd.f32 0.5, %v920_v41  ;;  %v925_v6 = vmul.f32 %v921_v49, %v844_v10 }
 0xc55   :  { %v924_v57 = vsel %vm286_vm3, %v2048_v5, %v922_v35 }
 0xc56   :  { %v926_v42 = vmul.f32 %v924_v57, %v921_v49 }
 0xc58   :  { %928 = vrot.lane.b32.xlu0 %v926_v42, %s2114_s2  ;;  %v3165_v42 = vsel %vm2277_vm1, %v2593_v18, %v2599_v17 }
 0xcca   :  { %v929_v50 = vpop.permute.xlu0 %928 }
 0xccb   :  { %v931_v11 = vadd.f32 %v929_v50, %v925_v6 }
 0xccd   :  { %2049 = vtanh.f32 %v931_v11 }
 0xcd7   :  { %v2050_v38 = vpop.eup %2049 }
 0xcd8   :  { %v2703_v21 = vmul.f32 %v2050_v38, %v924_v57 }
 0xcda   :  { %v950_v56 = vpack.c.bf16 %v2703_v21, %v2703_v21 }
 0xcdc   :  { %952 = vrot.lane.b32.xlu1 %v950_v56, %s2114_s2 }
 0xd4e   :  { %v953_v36 = vpop.permute.xlu1 %952 }
 0xd4f   :  { %1923 = vmatmul.mubr.msk.bf16.vlgmr.msra.gmra.mrb[28].mxu1 %vm344_vm4, %v953_v36 }
 0xd50   :  { %1126 = vmatpush1.bf16.msra.mxu1 %v2184_v12  ;;  %1157 = vmatprep.mubr.bf16.mxu1 %v3160_v37 }
 0xd51   :  { %1127 = vmatprep.subr.bf16.mxu1 %v2190_v13 }
 0xd54   :  { %1128 = vmatpush1.bf16.msra.mxu1 %v2198_v14 }
 0xd55   :  { %1129 = vmatprep.subr.bf16.mxu1 %v2219_v19 }
 0xd58   :  { %1130 = vmatpush1.bf16.msra.mxu1 %v2227_v22 }
 0xd59   :  { %1131 = vmatprep.subr.bf16.mxu1 %v2233_v23 }
 0xd5c   :  { %1132 = vmatpush1.bf16.msra.mxu1 %v2242_v24 }
 0xd5d   :  { %1291 = vmatprep.subr.bf16.mxu1 %v2179_v9 }
 0xe22   :  { %v991_v10 = vpop.f32.mrb[28].mxu1 }
 0xe23   :  { %v998_v1 = vadd.f32 %v991_v10, %v3165_v42  ;;  %v993_v59 = vpop.f32.mrb[29].mxu1 }
 0xe24   :  { %v999_v5 = vadd.f32 %v993_v59, %v3166_v15  ;;  %v995_v43 = vpop.f32.mrb[30].mxu1 }
 0xe25   :  { %v1000_v41 = vmul.f32 0.5, %v998_v1  ;;  %v996_v35 = vpop.f32.mrb[31].mxu1 }
 0xe26   :  { %v1001_v49 = vmul.f32 0.5, %v999_v5 }
 0xe27   :  { %2051 = vtanh.f32 %v1000_v41 }
 0xe28   :  { %v1003_v57 = vsel %vm286_vm3, %v999_v5, %v1001_v49 }
 0xe29   :  { %2053 = vtanh.f32 %v1003_v57 }
 0xe31   :  { %v2052_v6 = vpop.eup %2051 }
 0xe32   :  { %v1006_v38 = vmul.f32 0.5, %v2052_v6 }
 0xe33   :  { %v2054_v50 = vpop.eup %2053 }
 0xe34   :  { %v1007_v56 = vmul.f32 0.5, %v2054_v50  ;;  %v1008_v10 = vadd.f32 0.5, %v1006_v38 }
 0xe36   :  { %v1009_v36 = vadd.f32 0.5, %v1007_v56  ;;  %v1012_v1 = vmul.f32 %v1008_v10, %v931_v11 }
 0xe38   :  { %v1011_v42 = vsel %vm286_vm3, %v2054_v50, %v1009_v36 }
 0xe39   :  { %v1013_v8 = vmul.f32 %v1011_v42, %v1008_v10 }
 0xe3b   :  { %1015 = vrot.lane.b32.xlu0 %v1013_v8, %s2114_s2 }
 0xead   :  { %v1016_v59 = vpop.permute.xlu0 %1015 }
 0xeae   :  { %v1018_v15 = vadd.f32 %v1016_v59, %v1012_v1 }
 0xeb0   :  { %2055 = vtanh.f32 %v1018_v15 }
 0xeba   :  { %v2056_v43 = vpop.eup %2055 }
 0xebb   :  { %v2733_v41 = vmul.f32 %v2056_v43, %v1011_v42 }
 0xebd   :  { %v1035_v5 = vpack.c.bf16 %v2733_v41, %v2733_v41 }
 0xebf   :  { %1037 = vrot.lane.b32.xlu1 %v1035_v5, %s2114_s2 }
 0xf31   :  { %v1038_v35 = vpop.permute.xlu1 %1037 }
 0xf32   :  { %1924 = vmatmul.mubr.msk.bf16.vlgmr.msra.gmra.mrb[32].mxu0 %vm344_vm4, %v1038_v35 }
 0xf33   :  { %1209 = vmatpush1.bf16.msra.mxu0 %v2184_v12  ;;  %1240 = vmatprep.mubr.bf16.mxu0 %v3160_v37  ;;  %v3167_v12 = vsel %vm2277_vm1, %v2599_v17, %v2593_v18 }
 0xf34   :  { %1210 = vmatprep.subr.bf16.mxu0 %v2190_v13 }
 0xf37   :  { %1211 = vmatpush1.bf16.msra.mxu0 %v2198_v14  ;;  %v3168_v14 = vsel %vm2290_vm2, %v2602_v3, %v2596_v25 }
 0xf38   :  { %1212 = vmatprep.subr.bf16.mxu0 %v2219_v19 }
 0xf3b   :  { %1213 = vmatpush1.bf16.msra.mxu0 %v2227_v22 }
 0xf3c   :  { %1214 = vmatprep.subr.bf16.mxu0 %v2233_v23 }
 0xf3f   :  { %1215 = vmatpush1.bf16.msra.mxu0 %v2242_v24 }
 0xf40   :  { %1374 = vmatprep.subr.bf16.mxu0 %v2179_v9 }
0x1005   :  { %v1076_v8 = vpop.f32.mrb[32].mxu0 }
0x1006   :  { %v1083_v11 = vadd.f32 %v1076_v8, %v3167_v12  ;;  %v1078_v13 = vpop.f32.mrb[33].mxu0  ;;  %v2772_v12 = vld [vmem:[%s3140_s3] ss:$8 sps:$4 sm:$0xff]  }
0x1007   :  { %v1084_v19 = vadd.f32 %v1078_v13, %v3168_v14  ;;  %v1080_v49 = vpop.f32.mrb[34].mxu0  ;;  %v2791_v13 = vld [vmem:[%s3140_s3 + $0x24] ss:$8 sps:$4 sm:$0xff]  }
0x1008   :  { %v1085_v57 = vmul.f32 0.5, %v1083_v11  ;;  %v1081_v6 = vpop.f32.mrb[35].mxu0  ;;  %v2785_v11 = vld [vmem:[%s3140_s3 + $0x10] ss:$8 sps:$4 sm:$0xff]   ;;  %v2800_v14 = vld [vmem:[%s3140_s3 + $0x4] ss:$8 sps:$4 sm:$0xff]   ;;  %v3169_v49 = vsel %vm2277_vm1, %v2605_v28, %v2587_v27 }
0x1009   :  { %v1086_v50 = vmul.f32 0.5, %v1084_v19 }
0x100a   :  { %2057 = vtanh.f32 %v1085_v57 }
0x100b   :  { %v1088_v9 = vsel %vm286_vm3, %v1084_v19, %v1086_v50 }
0x100c   :  { %2059 = vtanh.f32 %v1088_v9 }
0x1014   :  { %v2058_v38 = vpop.eup %2057 }
0x1015   :  { %v1091_v17 = vmul.f32 0.5, %v2058_v38 }
0x1016   :  { %v2060_v56 = vpop.eup %2059 }
0x1017   :  { %v1092_v18 = vmul.f32 0.5, %v2060_v56  ;;  %v1093_v10 = vadd.f32 0.5, %v1091_v17 }
0x1019   :  { %v1094_v36 = vadd.f32 0.5, %v1092_v18  ;;  %v1097_v3 = vmul.f32 %v1093_v10, %v1018_v15  ;;  %v2779_v15 = vld [vmem:[%s3140_s3 + $0x14] ss:$8 sps:$4 sm:$0xff]  }
0x101b   :  { %v1096_v42 = vsel %vm286_vm3, %v2060_v56, %v1094_v36 }
0x101c   :  { %v1098_v25 = vmul.f32 %v1096_v42, %v1093_v10 }
0x101e   :  { %1100 = vrot.lane.b32.xlu0 %v1098_v25, %s2114_s2 }
0x1090   :  { %v1101_v1 = vpop.permute.xlu0 %1100 }
0x1091   :  { %v1103_v59 = vadd.f32 %v1101_v1, %v1097_v3 }
0x1093   :  { %2061 = vtanh.f32 %v1103_v59 }
0x109d   :  { %v2062_v43 = vpop.eup %2061 }
0x109e   :  { %v2763_v5 = vmul.f32 %v2062_v43, %v1096_v42 }
0x10a0   :  { %v1118_v35 = vpack.c.bf16 %v2763_v5, %v2763_v5 }
0x10a2   :  { %1120 = vrot.lane.b32.xlu1 %v1118_v35, %s2114_s2 }
0x1114   :  { %v1121_v8 = vpop.permute.xlu1 %1120 }
0x1115   :  { %1925 = vmatmul.mubr.msk.bf16.vlgmr.msra.gmra.mrb[32].mxu1 %vm344_vm4, %v1121_v8 }
0x1116   :  { %1292 = vmatpush1.bf16.msra.mxu1 %v2772_v12  ;;  %1323 = vmatprep.mubr.bf16.mxu1 %v3160_v37 }
0x1117   :  { %1293 = vmatprep.subr.bf16.mxu1 %v2779_v15 }
0x111a   :  { %1294 = vmatpush1.bf16.msra.mxu1 %v2785_v11 }
0x111b   :  { %1295 = vmatprep.subr.bf16.mxu1 %v2791_v13 }
0x111e   :  { %1296 = vmatpush1.bf16.msra.mxu1 %v2227_v22  ;;  %v3170_v22 = vsel %vm2290_vm2, %v2608_v39, %v2590_v26 }
0x111f   :  { %1297 = vmatprep.subr.bf16.mxu1 %v2233_v23 }
0x1122   :  { %1298 = vmatpush1.bf16.msra.mxu1 %v2242_v24 }
0x1123   :  { %1457 = vmatprep.subr.bf16.mxu1 %v2800_v14 }
0x11e8   :  { %v1159_v19 = vpop.f32.mrb[32].mxu1 }
0x11e9   :  { %v1166_v57 = vadd.f32 %v1159_v19, %v3169_v49  ;;  %v1161_v6 = vpop.f32.mrb[33].mxu1  ;;  %v2838_v19 = vld [vmem:[%s3140_s3 + $0x34] ss:$8 sps:$4 sm:$0xff]   ;;  %v2844_v49 = vld [vmem:[%s3140_s3 + $0x30] ss:$8 sps:$4 sm:$0xff]  }
0x11ea   :  { %v1167_v23 = vadd.f32 %v1161_v6, %v3170_v22  ;;  %v1163_v24 = vpop.f32.mrb[34].mxu1  ;;  %v3171_v6 = vsel %vm2277_vm1, %v2550_v4, %v2544_v32 }
0x11eb   :  { %v1168_v50 = vmul.f32 0.5, %v1166_v57  ;;  %v1164_v9 = vpop.f32.mrb[35].mxu1  ;;  %v3172_v24 = vsel %vm2290_vm2, %v2553_v30, %v2547_v62 }
0x11ec   :  { %v1169_v38 = vmul.f32 0.5, %v1167_v23 }
0x11ed   :  { %2063 = vtanh.f32 %v1168_v50 }
0x11ee   :  { %v1171_v56 = vsel %vm286_vm3, %v1167_v23, %v1169_v38 }
0x11ef   :  { %2065 = vtanh.f32 %v1171_v56 }
0x11f7   :  { %v2064_v17 = vpop.eup %2063 }
0x11f8   :  { %v1174_v27 = vmul.f32 0.5, %v2064_v17 }
0x11f9   :  { %v2066_v18 = vpop.eup %2065 }
0x11fa   :  { %v1175_v28 = vmul.f32 0.5, %v2066_v18  ;;  %v1176_v10 = vadd.f32 0.5, %v1174_v27 }
0x11fc   :  { %v1177_v36 = vadd.f32 0.5, %v1175_v28  ;;  %v1180_v39 = vmul.f32 %v1176_v10, %v1103_v59  ;;  %v2832_v59 = vld [vmem:[%s3140_s3 + $0x20] ss:$8 sps:$4 sm:$0xff]  }
0x11fe   :  { %v1179_v42 = vsel %vm286_vm3, %v2066_v18, %v1177_v36 }
0x11ff   :  { %v1181_v26 = vmul.f32 %v1179_v42, %v1176_v10 }
0x1201   :  { %1183 = vrot.lane.b32.xlu0 %v1181_v26, %s2114_s2 }
0x1273   :  { %v1184_v25 = vpop.permute.xlu0 %1183 }
0x1274   :  { %v1186_v3 = vadd.f32 %v1184_v25, %v1180_v39 }
0x1276   :  { %2067 = vtanh.f32 %v1186_v3 }
0x1280   :  { %v2068_v1 = vpop.eup %2067 }
0x1281   :  { %v2818_v43 = vmul.f32 %v2068_v1, %v1179_v42 }
0x1283   :  { %v1201_v35 = vpack.c.bf16 %v2818_v43, %v2818_v43 }
0x1285   :  { %1203 = vrot.lane.b32.xlu1 %v1201_v35, %s2114_s2 }
0x12f7   :  { %v1204_v8 = vpop.permute.xlu1 %1203 }
0x12f8   :  { %1926 = vmatmul.mubr.msk.bf16.vlgmr.msra.gmra.mrb[36].mxu0 %vm344_vm4, %v1204_v8 }
0x12f9   :  { %1375 = vmatpush1.bf16.msra.mxu0 %v2772_v12  ;;  %1406 = vmatprep.mubr.bf16.mxu0 %v3160_v37 }
0x12fa   :  { %1376 = vmatprep.subr.bf16.mxu0 %v2779_v15 }
0x12fd   :  { %1377 = vmatpush1.bf16.msra.mxu0 %v2785_v11 }
0x12fe   :  { %1378 = vmatprep.subr.bf16.mxu0 %v2791_v13 }
0x1301   :  { %1379 = vmatpush1.bf16.msra.mxu0 %v2832_v59 }
0x1302   :  { %1380 = vmatprep.subr.bf16.mxu0 %v2838_v19 }
0x1305   :  { %1381 = vmatpush1.bf16.msra.mxu0 %v2844_v49 }
0x1306   :  { %1540 = vmatprep.subr.bf16.mxu0 %v2800_v14 }
0x13cb   :  { %v1242_v57 = vpop.f32.mrb[36].mxu0 }
0x13cc   :  { %v1249_v22 = vadd.f32 %v1242_v57, %v3171_v6  ;;  %v1244_v23 = vpop.f32.mrb[37].mxu0  ;;  %v3173_v57 = vsel %vm2277_vm1, %v2524_v63, %v2521_v34 }
0x13cd   :  { %v1250_v50 = vadd.f32 %v1244_v23, %v3172_v24  ;;  %v1246_v9 = vpop.f32.mrb[38].mxu0  ;;  %v3174_v23 = vsel %vm2290_vm2, %v2556_v29, %v2541_v16 }
0x13ce   :  { %v1251_v38 = vmul.f32 0.5, %v1249_v22  ;;  %v1247_v56 = vpop.f32.mrb[39].mxu0 }
0x13cf   :  { %v1252_v17 = vmul.f32 0.5, %v1250_v50 }
0x13d0   :  { %2069 = vtanh.f32 %v1251_v38 }
0x13d1   :  { %v1254_v18 = vsel %vm286_vm3, %v1250_v50, %v1252_v17 }
0x13d2   :  { %2071 = vtanh.f32 %v1254_v18 }
0x13da   :  { %v2070_v27 = vpop.eup %2069 }
0x13db   :  { %v1257_v32 = vmul.f32 0.5, %v2070_v27 }
0x13dc   :  { %v2072_v28 = vpop.eup %2071 }
0x13dd   :  { %v1258_v4 = vmul.f32 0.5, %v2072_v28  ;;  %v1259_v10 = vadd.f32 0.5, %v1257_v32 }
0x13df   :  { %v1260_v36 = vadd.f32 0.5, %v1258_v4  ;;  %v1263_v62 = vmul.f32 %v1259_v10, %v1186_v3 }
0x13e1   :  { %v1262_v42 = vsel %vm286_vm3, %v2072_v28, %v1260_v36 }
0x13e2   :  { %v1264_v30 = vmul.f32 %v1262_v42, %v1259_v10 }
0x13e4   :  { %1266 = vrot.lane.b32.xlu0 %v1264_v30, %s2114_s2 }
0x1456   :  { %v1267_v26 = vpop.permute.xlu0 %1266 }
0x1457   :  { %v1269_v39 = vadd.f32 %v1267_v26, %v1263_v62 }
0x1459   :  { %2073 = vtanh.f32 %v1269_v39 }
0x1463   :  { %v2074_v25 = vpop.eup %2073 }
0x1464   :  { %v2863_v1 = vmul.f32 %v2074_v25, %v1262_v42 }
0x1466   :  { %v1284_v35 = vpack.c.bf16 %v2863_v1, %v2863_v1 }
0x1468   :  { %1286 = vrot.lane.b32.xlu1 %v1284_v35, %s2114_s2 }
0x14da   :  { %v1287_v8 = vpop.permute.xlu1 %1286 }
0x14db   :  { %1927 = vmatmul.mubr.msk.bf16.vlgmr.msra.gmra.mrb[36].mxu1 %vm344_vm4, %v1287_v8  ;;  %v3176_v8 = vsel %vm2290_vm2, %v2295_v52, %v2333_v7 }
0x14dc   :  { %1458 = vmatpush1.bf16.msra.mxu1 %v2772_v12  ;;  %1489 = vmatprep.mubr.bf16.mxu1 %v3160_v37 }
0x14dd   :  { %1459 = vmatprep.subr.bf16.mxu1 %v2779_v15 }
0x14e0   :  { %1460 = vmatpush1.bf16.msra.mxu1 %v2785_v11 }
0x14e1   :  { %1461 = vmatprep.subr.bf16.mxu1 %v2791_v13 }
0x14e4   :  { %1462 = vmatpush1.bf16.msra.mxu1 %v2832_v59 }
0x14e5   :  { %1463 = vmatprep.subr.bf16.mxu1 %v2838_v19 }
0x14e8   :  { %1464 = vmatpush1.bf16.msra.mxu1 %v2844_v49 }
0x14e9   :  { %1623 = vmatprep.subr.bf16.mxu1 %v2800_v14 }
0x15ae   :  { %v1325_v3 = vpop.f32.mrb[36].mxu1 }
0x15af   :  { %v1332_v6 = vadd.f32 %v1325_v3, %v3173_v57  ;;  %v1327_v22 = vpop.f32.mrb[37].mxu1 }
0x15b0   :  { %v1333_v24 = vadd.f32 %v1327_v22, %v3174_v23  ;;  %v1329_v50 = vpop.f32.mrb[38].mxu1 }
0x15b1   :  { %v1334_v9 = vmul.f32 0.5, %v1332_v6  ;;  %v1330_v38 = vpop.f32.mrb[39].mxu1 }
0x15b2   :  { %v1335_v56 = vmul.f32 0.5, %v1333_v24 }
0x15b3   :  { %2075 = vtanh.f32 %v1334_v9 }
0x15b4   :  { %v1337_v14 = vsel %vm286_vm3, %v1333_v24, %v1335_v56 }
0x15b5   :  { %2077 = vtanh.f32 %v1337_v14 }
0x15bd   :  { %v2076_v17 = vpop.eup %2075 }
0x15be   :  { %v1340_v34 = vmul.f32 0.5, %v2076_v17 }
0x15bf   :  { %v2078_v18 = vpop.eup %2077 }
0x15c0   :  { %v1341_v63 = vmul.f32 0.5, %v2078_v18  ;;  %v1342_v28 = vadd.f32 0.5, %v1340_v34 }
0x15c2   :  { %v1343_v27 = vadd.f32 0.5, %v1341_v63  ;;  %v1346_v16 = vmul.f32 %v1342_v28, %v1269_v39  ;;  %v3175_v39 = vsel %vm2277_vm1, %v2282_v46, %v2319_v0 }
0x15c4   :  { %v1345_v32 = vsel %vm286_vm3, %v2078_v18, %v1343_v27 }
0x15c5   :  { %v1347_v29 = vmul.f32 %v1345_v32, %v1342_v28 }
0x15c7   :  { %1349 = vrot.lane.b32.xlu0 %v1347_v29, %s2114_s2 }
0x1639   :  { %v1350_v4 = vpop.permute.xlu0 %1349 }
0x163a   :  { %v1352_v36 = vadd.f32 %v1350_v4, %v1346_v16 }
0x163c   :  { %2079 = vtanh.f32 %v1352_v36 }
0x1646   :  { %v2080_v10 = vpop.eup %2079 }
0x1647   :  { %v2893_v42 = vmul.f32 %v2080_v10, %v1345_v32 }
0x1649   :  { %v1367_v30 = vpack.c.bf16 %v2893_v42, %v2893_v42 }
0x164b   :  { %1369 = vrot.lane.b32.xlu1 %v1367_v30, %s2114_s2 }
0x16bd   :  { %v1370_v62 = vpop.permute.xlu1 %1369 }
0x16be   :  { %1928 = vmatmul.mubr.msk.bf16.vlgmr.msra.gmra.mrb[40].mxu0 %vm344_vm4, %v1370_v62 }
0x16bf   :  { %1541 = vmatpush1.bf16.msra.mxu0 %v2772_v12  ;;  %1572 = vmatprep.mubr.bf16.mxu0 %v3160_v37 }
0x16c0   :  { %1542 = vmatprep.subr.bf16.mxu0 %v2779_v15 }
0x16c3   :  { %1543 = vmatpush1.bf16.msra.mxu0 %v2785_v11 }
0x16c4   :  { %1544 = vmatprep.subr.bf16.mxu0 %v2791_v13 }
0x16c7   :  { %1545 = vmatpush1.bf16.msra.mxu0 %v2832_v59 }
0x16c8   :  { %1546 = vmatprep.subr.bf16.mxu0 %v2838_v19 }
0x16cb   :  { %1547 = vmatpush1.bf16.msra.mxu0 %v2844_v49 }
0x1791   :  { %v1408_v26 = vpop.f32.mrb[40].mxu0 }
0x1792   :  { %v1415_v25 = vadd.f32 %v1408_v26, %v3175_v39  ;;  %v1410_v35 = vpop.f32.mrb[41].mxu0 }
0x1793   :  { %v1416_v3 = vadd.f32 %v1410_v35, %v3176_v8  ;;  %v1412_v57 = vpop.f32.mrb[42].mxu0 }
0x1794   :  { %v1417_v6 = vmul.f32 0.5, %v1415_v25  ;;  %v1413_v22 = vpop.f32.mrb[43].mxu0 }
0x1795   :  { %v1418_v23 = vmul.f32 0.5, %v1416_v3 }
0x1796   :  { %2081 = vtanh.f32 %v1417_v6  ;;  %v3179_v6 = vsel %vm2277_vm1, %v2304_v55, %v2275_v44 }
0x1797   :  { %v1420_v24 = vsel %vm286_vm3, %v1416_v3, %v1418_v23 }
0x1798   :  { %2083 = vtanh.f32 %v1420_v24  ;;  %v3180_v24 = vsel %vm2290_vm2, %v2316_v61, %v2288_v48 }
0x17a0   :  { %v2082_v50 = vpop.eup %2081 }
0x17a1   :  { %v1423_v46 = vmul.f32 0.5, %v2082_v50 }
0x17a2   :  { %v2084_v9 = vpop.eup %2083 }
0x17a3   :  { %v1424_v0 = vmul.f32 0.5, %v2084_v9  ;;  %v1425_v56 = vadd.f32 0.5, %v1423_v46 }
0x17a5   :  { %v1426_v38 = vadd.f32 0.5, %v1424_v0  ;;  %v1429_v7 = vmul.f32 %v1425_v56, %v1352_v36 }
0x17a7   :  { %v1428_v14 = vsel %vm286_vm3, %v2084_v9, %v1426_v38 }
0x17a8   :  { %v1430_v52 = vmul.f32 %v1428_v14, %v1425_v56 }
0x17aa   :  { %1432 = vrot.lane.b32.xlu0 %v1430_v52, %s2114_s2 }
0x181c   :  { %v1433_v17 = vpop.permute.xlu0 %1432 }
0x181d   :  { %v1435_v18 = vadd.f32 %v1433_v17, %v1429_v7 }
0x181f   :  { %2085 = vtanh.f32 %v1435_v18 }
0x1829   :  { %v2086_v34 = vpop.eup %2085 }
0x182a   :  { %v2922_v63 = vmul.f32 %v2086_v34, %v1428_v14 }
0x182c   :  { %v1450_v27 = vpack.c.bf16 %v2922_v63, %v2922_v63 }
0x182e   :  { %1452 = vrot.lane.b32.xlu1 %v1450_v27, %s2114_s2 }
0x18a0   :  { %v1453_v28 = vpop.permute.xlu1 %1452 }
0x18a1   :  { %1929 = vmatmul.mubr.msk.bf16.vlgmr.msra.gmra.mrb[40].mxu1 %vm344_vm4, %v1453_v28 }
0x18a2   :  { %1624 = vmatpush1.bf16.msra.mxu1 %v2772_v12  ;;  %1655 = vmatprep.mubr.bf16.mxu1 %v3160_v37  ;;  %v3177_v12 = vsel %vm2277_vm1, %v2298_v53, %v2301_v54 }
0x18a3   :  { %1625 = vmatprep.subr.bf16.mxu1 %v2779_v15  ;;  %v3178_v15 = vsel %vm2290_vm2, %v2307_v58, %v2313_v60 }
0x18a6   :  { %1626 = vmatpush1.bf16.msra.mxu1 %v2785_v11 }
0x18a7   :  { %1627 = vmatprep.subr.bf16.mxu1 %v2791_v13 }
0x18aa   :  { %1628 = vmatpush1.bf16.msra.mxu1 %v2832_v59 }
0x18ab   :  { %1629 = vmatprep.subr.bf16.mxu1 %v2838_v19 }
0x18ae   :  { %1630 = vmatpush1.bf16.msra.mxu1 %v2844_v49 }
0x1974   :  { %v1491_v32 = vpop.f32.mrb[40].mxu1 }
0x1975   :  { %v1498_v29 = vadd.f32 %v1491_v32, %v3177_v12  ;;  %v1493_v37 = vpop.f32.mrb[41].mxu1 }
0x1976   :  { %v1499_v11 = vadd.f32 %v1493_v37, %v3178_v15  ;;  %v1495_v13 = vpop.f32.mrb[42].mxu1  ;;  %v3181_v37 = vsel %vm2277_vm1, %v2322_v2, %v2285_v47 }
0x1977   :  { %v1500_v59 = vmul.f32 0.5, %v1498_v29  ;;  %v1496_v16 = vpop.f32.mrb[43].mxu1  ;;  %v3182_v13 = vld [vmem:[#allocation5_spill] sm:$0xff] }
0x1978   :  { %v1501_v19 = vmul.f32 0.5, %v1499_v11 }
0x1979   :  { %2087 = vtanh.f32 %v1500_v59  ;;  %v3183_v59 = vld [vmem:[#allocation4_spill] sm:$0xff] }
0x197a   :  { %v1503_v49 = vsel %vm286_vm3, %v1499_v11, %v1501_v19  ;;  %v3184_v16 = vsel %vm2290_vm2, %v3182_v13, %v3183_v59 }
0x197b   :  { %2089 = vtanh.f32 %v1503_v49 }
0x1983   :  { %v2088_v4 = vpop.eup %2087 }
0x1984   :  { %v1506_v53 = vmul.f32 0.5, %v2088_v4 }
0x1985   :  { %v2090_v36 = vpop.eup %2089 }
0x1986   :  { %v1507_v54 = vmul.f32 0.5, %v2090_v36  ;;  %v1508_v30 = vadd.f32 0.5, %v1506_v53 }
0x1988   :  { %v1509_v10 = vadd.f32 0.5, %v1507_v54  ;;  %v1512_v60 = vmul.f32 %v1508_v30, %v1435_v18 }
0x198a   :  { %v1511_v62 = vsel %vm286_vm3, %v2090_v36, %v1509_v10 }
0x198b   :  { %v1513_v58 = vmul.f32 %v1511_v62, %v1508_v30 }
0x198d   :  { %1515 = vrot.lane.b32.xlu0 %v1513_v58, %s2114_s2 }
0x19ff   :  { %v1516_v26 = vpop.permute.xlu0 %1515 }
0x1a00   :  { %v1518_v39 = vadd.f32 %v1516_v26, %v1512_v60  ;;  %v3185_v60 = vld [vmem:[#allocation6_spill] sm:$0xff]  ;;  %v3186_v26 = vld [vmem:[#allocation7_spill] sm:$0xff] }
0x1a02   :  { %2091 = vtanh.f32 %v1518_v39 }
0x1a0c   :  { %v2092_v25 = vpop.eup %2091 }
0x1a0d   :  { %v2951_v35 = vmul.f32 %v2092_v25, %v1511_v62  ;;  %v3187_v25 = vld [vmem:[#allocation8_spill] sm:$0xff] }
0x1a0f   :  { %v1533_v8 = vpack.c.bf16 %v2951_v35, %v2951_v35 }
0x1a11   :  { %1535 = vrot.lane.b32.xlu1 %v1533_v8, %s2114_s2 }
0x1a83   :  { %v1536_v3 = vpop.permute.xlu1 %1535 }
0x1a84   :  { %1930 = vmatmul.mubr.msk.bf16.vlgmr.msra.gmra.mrb[44].mxu0 %vm344_vm4, %v1536_v3 }
0x1b57   :  { %v1574_v57 = vpop.f32.mrb[44].mxu0 }
0x1b58   :  { %v1581_v22 = vadd.f32 %v1574_v57, %v3179_v6  ;;  %v1576_v23 = vpop.f32.mrb[45].mxu0 }
0x1b59   :  { %v1582_v50 = vadd.f32 %v1576_v23, %v3180_v24  ;;  %v1578_v9 = vpop.f32.mrb[46].mxu0  ;;  %v2008_v23 = vld [vmem:[%s3142_s4 + $0x18] sm:$0xff]  }
0x1b5a   :  { %v1583_v46 = vmul.f32 0.5, %v1581_v22  ;;  %v1579_v0 = vpop.f32.mrb[47].mxu0 }
0x1b5b   :  { %v1584_v38 = vmul.f32 0.5, %v1582_v50 }
0x1b5c   :  { %2093 = vtanh.f32 %v1583_v46 }
0x1b5d   :  { %v1586_v56 = vsel %vm286_vm3, %v1582_v50, %v1584_v38 }
0x1b5e   :  { %2095 = vtanh.f32 %v1586_v56 }
0x1b66   :  { %v2094_v14 = vpop.eup %2093 }
0x1b67   :  { %v1589_v44 = vmul.f32 0.5, %v2094_v14 }
0x1b68   :  { %v2096_v52 = vpop.eup %2095 }
0x1b69   :  { %v1590_v55 = vmul.f32 0.5, %v2096_v52  ;;  %v1591_v17 = vadd.f32 0.5, %v1589_v44 }
0x1b6b   :  { %v1592_v7 = vadd.f32 0.5, %v1590_v55  ;;  %v1595_v61 = vmul.f32 %v1591_v17, %v1518_v39  ;;  %v2005_v39 = vld [vmem:[%s3142_s4] sm:$0xff]  }
0x1b6c   :  { %1957 = vmatprep.subr.bf16.mxu0 %v2005_v39 }
0x1b6d   :  { %v1594_v18 = vsel %vm286_vm3, %v2096_v52, %v1592_v7  ;;  %1958 = vmatpush3.bf16.msra.mxu0 %v2005_v39 }
0x1b6e   :  { %v1596_v48 = vmul.f32 %v1594_v18, %v1591_v17  ;;  %1959 = vmatprep.subr.bf16.mxu0 %v2006_v31 }
0x1b70   :  { %1598 = vrot.lane.b32.xlu0 %v1596_v48, %s2114_s2 }
0x1b71   :  { %1960 = vmatpush3.bf16.msra.mxu0 %v2006_v31 }
0x1be2   :  { %v1599_v34 = vpop.permute.xlu0 %1598 }
0x1be3   :  { %v1601_v27 = vadd.f32 %v1599_v34, %v1595_v61 }
0x1be5   :  { %2097 = vtanh.f32 %v1601_v27 }
0x1bef   :  { %v2098_v28 = vpop.eup %2097 }
0x1bf0   :  { %v1603_v32 = vmul.f32 %v2098_v28, %v1594_v18 }
0x1bf2   :  { %v1616_v12 = vpack.c.bf16 %v1603_v32, %v1603_v32 }
0x1bf4   :  { %1618 = vrot.lane.b32.xlu1 %v1616_v12, %s2114_s2 }
0x1bf8   :  { %413 = vrot.lane.b32.xlu1 %v2400_v33, %s2114_s2 }
0x1bfc   :  { %587 = vrot.lane.b32.xlu1 %v2450_v20, %s2114_s2 }
0x1c00   :  { %1605 = vrot.lane.b32.xlu1 %v1603_v32, %s2114_s2 }
0x1c04   :  { %1439 = vrot.lane.b32.xlu1 %v2922_v63, %s2114_s2 }
0x1c08   :  { %761 = vrot.lane.b32.xlu1 %v2648_v40, %s2114_s2 }
0x1c0c   :  { %935 = vrot.lane.b32.xlu1 %v2703_v21, %s2114_s2 }
0x1c10   :  { %1273 = vrot.lane.b32.xlu1 %v2863_v1, %s2114_s2 }
0x1c14   :  { %1107 = vrot.lane.b32.xlu1 %v2763_v5, %s2114_s2 }
0x1c66   :  { %v1619_v33 = vpop.permute.xlu1 %1618 }
0x1c67   :  { %1931 = vmatmul.mubr.msk.bf16.vlgmr.msra.gmra.mrb[44].mxu1 %vm344_vm4, %v1619_v33 }
0x1c6a   :  { %v414_v20 = vpop.permute.xlu1 %413 }
0x1c6b   :  { %416 = vst.msk [vmem:[#allocation3] sm:$0xff] %vm84_vm0, %v414_v20 }
0x1c6c   :  { %419 = vst.msk [vmem:[#allocation3 + $0x78] sm:$0xff] %vm418_vm5, %v414_v20 }
0x1c6e   :  { %v588_v63 = vpop.permute.xlu1 %587 }
0x1c6f   :  { %591 = vst.msk [vmem:[#allocation3 + $0x10] sm:$0xff] %vm84_vm0, %v588_v63 }
0x1c70   :  { %593 = vst.msk [vmem:[#allocation3 + $0x68] sm:$0xff] %vm418_vm5, %v588_v63 }
0x1c72   :  { %v1606_v40 = vpop.permute.xlu1 %1605 }
0x1c76   :  { %v1440_v21 = vpop.permute.xlu1 %1439 }
0x1c7a   :  { %v762_v1 = vpop.permute.xlu1 %761 }
0x1c7b   :  { %765 = vst.msk [vmem:[#allocation3 + $0x20] sm:$0xff] %vm84_vm0, %v762_v1 }
0x1c7c   :  { %767 = vst.msk [vmem:[#allocation3 + $0x58] sm:$0xff] %vm418_vm5, %v762_v1 }
0x1c7e   :  { %v936_v5 = vpop.permute.xlu1 %935 }
0x1c7f   :  { %939 = vst.msk [vmem:[#allocation3 + $0x30] sm:$0xff] %vm84_vm0, %v936_v5 }
0x1c80   :  { %941 = vst.msk [vmem:[#allocation3 + $0x48] sm:$0xff] %vm418_vm5, %v936_v5 }
0x1c82   :  { %v1274_v0 = vpop.permute.xlu1 %1273 }
0x1c86   :  { %v1108_v14 = vpop.permute.xlu1 %1107 }
0x1d3a   :  { %v1657_v29 = vpop.f32.mrb[44].mxu1 }
0x1d3b   :  { %v1664_v15 = vadd.f32 %v1657_v29, %v3181_v37  ;;  %v1659_v11 = vpop.f32.mrb[45].mxu1 }
0x1d3c   :  { %v1665_v19 = vadd.f32 %v1659_v11, %v3184_v16  ;;  %v1661_v49 = vpop.f32.mrb[46].mxu1  ;;  %v1932_v11 = vld [vmem:[%s3143_s5] ss:$0 sm:$0xff] }
0x1d3d   :  { %v1666_v4 = vmul.f32 0.5, %v1664_v15  ;;  %v1662_v36 = vpop.f32.mrb[47].mxu1 }
0x1d3e   :  { %v1667_v53 = vmul.f32 0.5, %v1665_v19 }
0x1d3f   :  { %2099 = vtanh.f32 %v1666_v4 }
0x1d40   :  { %v1669_v54 = vsel %vm286_vm3, %v1665_v19, %v1667_v53 }
0x1d41   :  { %2101 = vtanh.f32 %v1669_v54 }
0x1d49   :  { %v2100_v45 = vpop.eup %2099 }
0x1d4a   :  { %v1672_v47 = vmul.f32 0.5, %v2100_v45 }
0x1d4b   :  { %v2102_v10 = vpop.eup %2101 }
0x1d4c   :  { %v1673_v2 = vmul.f32 0.5, %v2102_v10  ;;  %v1674_v62 = vadd.f32 0.5, %v1672_v47 }
0x1d4e   :  { %v1675_v30 = vadd.f32 0.5, %v1673_v2  ;;  %v1678_v8 = vmul.f32 %v1674_v62, %v1601_v27 }
0x1d50   :  { %v1677_v51 = vsel %vm286_vm3, %v2102_v10, %v1675_v30 }
0x1d51   :  { %v1679_v58 = vmul.f32 %v1677_v51, %v1674_v62 }
0x1d53   :  { %1681 = vrot.lane.b32.xlu0 %v1679_v58, %s2114_s2 }
0x1d57   :  { %500 = vrot.lane.b32.xlu0 %v3185_v60, %s2114_s2 }
0x1d5b   :  { %674 = vrot.lane.b32.xlu0 %v3186_v26, %s2114_s2 }
0x1d5f   :  { %1522 = vrot.lane.b32.xlu0 %v2951_v35, %s2114_s2  ;;  %v2007_v35 = vld [vmem:[%s3142_s4 + $0x10] sm:$0xff]  }
0x1d60   :  { %1961 = vmatprep.subr.bf16.mxu0 %v2007_v35 }
0x1d61   :  { %1962 = vmatpush3.bf16.msra.mxu0 %v2007_v35 }
0x1d62   :  { %1963 = vmatprep.subr.bf16.mxu0 %v2008_v23 }
0x1d63   :  { %848 = vrot.lane.b32.xlu0 %v3187_v25, %s2114_s2 }
0x1d65   :  { %1964 = vmatpush3.bf16.msra.mxu0 %v2008_v23 }
0x1dc5   :  { %v1682_v3 = vpop.permute.xlu0 %1681 }
0x1dc6   :  { %v1684_v57 = vadd.f32 %v1682_v3, %v1678_v8 }
0x1dc8   :  { %2103 = vtanh.f32 %v1684_v57 }
0x1dc9   :  { %v501_v6 = vpop.permute.xlu0 %500 }
0x1dca   :  { %504 = vst.msk [vmem:[#allocation3 + $0x8] sm:$0xff] %vm84_vm0, %v501_v6 }
0x1dcb   :  { %506 = vst.msk [vmem:[#allocation3 + $0x70] sm:$0xff] %vm418_vm5, %v501_v6  ;;  %1609 = vst.msk [vmem:[#allocation3 + $0x8] sm:$0xff] %vm418_vm5, %v1606_v40 }
0x1dcc   :  { %1608 = vst.msk [vmem:[#allocation3 + $0x70] sm:$0xff] %vm84_vm0, %v1606_v40 }
0x1dcd   :  { %v675_v22 = vpop.permute.xlu0 %674 }
0x1dce   :  { %678 = vst.msk [vmem:[#allocation3 + $0x18] sm:$0xff] %vm84_vm0, %v675_v22 }
0x1dcf   :  { %680 = vst.msk [vmem:[#allocation3 + $0x60] sm:$0xff] %vm418_vm5, %v675_v22  ;;  %1443 = vst.msk [vmem:[#allocation3 + $0x18] sm:$0xff] %vm418_vm5, %v1440_v21 }
0x1dd0   :  { %1442 = vst.msk [vmem:[#allocation3 + $0x60] sm:$0xff] %vm84_vm0, %v1440_v21 }
0x1dd1   :  { %v1523_v24 = vpop.permute.xlu0 %1522 }
0x1dd2   :  { %v2104_v50 = vpop.eup %2103  ;;  %1525 = vst.msk [vmem:[#allocation3 + $0x68] sm:$0xff] %vm84_vm0, %v1523_v24  ;;  %v1694_v44 = vld [vmem:[#allocation3 + $0x8] sm:$0xff] }
0x1dd3   :  { %1526 = vst.msk [vmem:[#allocation3 + $0x10] sm:$0xff] %vm418_vm5, %v1523_v24  ;;  %v1686_v9 = vmul.f32 %v2104_v50, %v1677_v51  ;;  %v1707_v37 = vld [vmem:[#allocation3 + $0x70] sm:$0xff] }
0x1dd5   :  { %1688 = vrot.lane.b32.xlu0 %v1686_v9, %s2114_s2  ;;  %v849_v46 = vpop.permute.xlu0 %848 }
0x1dd6   :  { %852 = vst.msk [vmem:[#allocation3 + $0x28] sm:$0xff] %vm84_vm0, %v849_v46  ;;  %v1696_v55 = vld [vmem:[#allocation3 + $0x18] sm:$0xff] }
0x1dd7   :  { %854 = vst.msk [vmem:[#allocation3 + $0x50] sm:$0xff] %vm418_vm5, %v849_v46  ;;  %1277 = vst.msk [vmem:[#allocation3 + $0x28] sm:$0xff] %vm418_vm5, %v1274_v0  ;;  %v1705_v1 = vld [vmem:[#allocation3 + $0x60] sm:$0xff] }
0x1dd8   :  { %1276 = vst.msk [vmem:[#allocation3 + $0x50] sm:$0xff] %vm84_vm0, %v1274_v0 }
0x1dd9   :  { %1022 = vrot.lane.b32.xlu0 %v2733_v41, %s2114_s2  ;;  %v1706_v63 = vld [vmem:[#allocation3 + $0x68] sm:$0xff] }
0x1dda   :  { %v1695_v41 = vld [vmem:[#allocation3 + $0x10] sm:$0xff]  ;;  %v1715_v5 = vpack.c.bf16 %v1706_v63, %v1705_v1 }
0x1ddb   :  { %v1710_v7 = vpack.c.bf16 %v1696_v55, %v1695_v41 }
0x1ddd   :  { %1356 = vrot.lane.b32.xlu0 %v2893_v42, %s2114_s2 }
0x1dde   :  { %v1698_v48 = vld [vmem:[#allocation3 + $0x28] sm:$0xff] }
0x1ddf   :  { %v1703_v40 = vld [vmem:[#allocation3 + $0x50] sm:$0xff] }
0x1de1   :  { %1190 = vrot.lane.b32.xlu0 %v2818_v43, %s2114_s2 }
0x1e47   :  { %v1689_v38 = vpop.permute.xlu0 %1688 }
0x1e48   :  { %1691 = vst.msk [vmem:[#allocation3 + $0x78] sm:$0xff] %vm84_vm0, %v1689_v38 }
0x1e49   :  { %1692 = vst.msk [vmem:[#allocation3] sm:$0xff] %vm418_vm5, %v1689_v38 }
0x1e4b   :  { %v1023_v56 = vpop.permute.xlu0 %1022 }
0x1e4c   :  { %1026 = vst.msk [vmem:[#allocation3 + $0x38] sm:$0xff] %vm84_vm0, %v1023_v56 }
0x1e4d   :  { %1028 = vst.msk [vmem:[#allocation3 + $0x40] sm:$0xff] %vm418_vm5, %v1023_v56  ;;  %1111 = vst.msk [vmem:[#allocation3 + $0x38] sm:$0xff] %vm418_vm5, %v1108_v14 }
0x1e4e   :  { %1110 = vst.msk [vmem:[#allocation3 + $0x40] sm:$0xff] %vm84_vm0, %v1108_v14 }
0x1e4f   :  { %v1357_v42 = vpop.permute.xlu0 %1356  ;;  %v1708_v29 = vld [vmem:[#allocation3 + $0x78] sm:$0xff] }
0x1e50   :  { %v1693_v52 = vld [vmem:[#allocation3] sm:$0xff]  ;;  %1359 = vst.msk [vmem:[#allocation3 + $0x58] sm:$0xff] %vm84_vm0, %v1357_v42  ;;  %v1716_v15 = vpack.c.bf16 %v1708_v29, %v1707_v37 }
0x1e51   :  { %1360 = vst.msk [vmem:[#allocation3 + $0x20] sm:$0xff] %vm418_vm5, %v1357_v42  ;;  %v1709_v43 = vpack.c.bf16 %v1694_v44, %v1693_v52 }
0x1e53   :  { %1965 = vmatprep.mubr.msk.bf16.mxu0 %vm344_vm4, %v1709_v43  ;;  %v1191_v17 = vpop.permute.xlu0 %1190 }
0x1e54   :  { %1966 = vmatmul.mubr.msk.bf16.vlgmr.msra.gmra.mrb[48].mxu0 %vm344_vm4, %v1710_v7  ;;  %1193 = vst.msk [vmem:[#allocation3 + $0x48] sm:$0xff] %vm84_vm0, %v1191_v17  ;;  %v1700_v34 = vld [vmem:[#allocation3 + $0x38] sm:$0xff] }
0x1e55   :  { %1194 = vst.msk [vmem:[#allocation3 + $0x30] sm:$0xff] %vm418_vm5, %v1191_v17  ;;  %v1701_v28 = vld [vmem:[#allocation3 + $0x40] sm:$0xff] }
0x1e57   :  { %v1704_v20 = vld [vmem:[#allocation3 + $0x58] sm:$0xff] }
0x1e58   :  { %v1697_v18 = vld [vmem:[#allocation3 + $0x20] sm:$0xff]  ;;  %v1714_v21 = vpack.c.bf16 %v1704_v20, %v1703_v40 }
0x1e59   :  { %v1711_v61 = vpack.c.bf16 %v1698_v48, %v1697_v18 }
0x1e5b   :  { %1969 = vmatprep.mubr.msk.bf16.mxu0 %vm344_vm4, %v1711_v61  ;;  %v1702_v32 = vld [vmem:[#allocation3 + $0x48] sm:$0xff] }
0x1e5c   :  { %v1699_v27 = vld [vmem:[#allocation3 + $0x30] sm:$0xff]  ;;  %v1713_v33 = vpack.c.bf16 %v1702_v32, %v1701_v28 }
0x1e5d   :  { %v1712_v12 = vpack.c.bf16 %v1700_v34, %v1699_v27 }
0x1e5f   :  { %1970 = vmatmul.mubr.msk.bf16.gmra.mrb[52].mxu0 %vm344_vm4, %v1712_v12 }
0x1e60   :  { %1973 = vmatprep.mubr.msk.bf16.mxu0 %vm344_vm4, %v1713_v33 }
0x1e67   :  { %1974 = vmatmul.mubr.msk.bf16.gmra.mrb[56].mxu0 %vm344_vm4, %v1714_v21 }
0x1e68   :  { %1977 = vmatprep.mubr.msk.bf16.mxu0 %vm344_vm4, %v1715_v5 }
0x1e6f   :  { %1978 = vmatmul.mubr.msk.bf16.gmra.mrb[60].mxu0 %vm344_vm4, %v1716_v15 }
0x1f27   :  { %v1967_v13 = vpop.f32.mrb[48].mxu0 }
0x1f28   :  { %v1823_v59 = vadd.f32 %v1967_v13, %v1932_v11  ;;  %v1814_v16 = vpop.f32.mrb[49].mxu0 }
0x1f29   :  { %v1815_v19 = vadd.f32 %v1932_v11, %v1814_v16  ;;  %v1968_v49 = vpop.f32.mrb[50].mxu0 }
0x1f2a   :  { %1879 = vst.msk [vmem:[%s3144_s6 + $0x10] sm:$0xff] %vm84_vm0, %v1823_v59  ;;  %v1826_v4 = vadd.f32 %v1968_v49, %v1932_v11  ;;  %v1817_v36 = vpop.f32.mrb[51].mxu0 }
0x1f2b   :  { %1877 = vst.msk [vmem:[%s3144_s6] sm:$0xff] %vm84_vm0, %v1815_v19  ;;  %v1818_v53 = vadd.f32 %v1932_v11, %v1817_v36 }
0x1f2c   :  { %1880 = vst.msk [vmem:[%s3144_s6 + $0x18] sm:$0xff] %vm84_vm0, %v1826_v4 }
0x1f2d   :  { %1878 = vst.msk [vmem:[%s3144_s6 + $0x8] sm:$0xff] %vm84_vm0, %v1818_v53 }
0x1f32   :  { %v1971_v54 = vpop.f32.mrb[52].mxu0 }
0x1f33   :  { %v1839_v45 = vadd.f32 %v1971_v54, %v1932_v11  ;;  %v1830_v10 = vpop.f32.mrb[53].mxu0 }
0x1f34   :  { %v1831_v47 = vadd.f32 %v1932_v11, %v1830_v10  ;;  %v1972_v2 = vpop.f32.mrb[54].mxu0 }
0x1f35   :  { %1883 = vst.msk [vmem:[%s3144_s6 + $0x30] sm:$0xff] %vm84_vm0, %v1839_v45  ;;  %v1842_v30 = vadd.f32 %v1972_v2, %v1932_v11  ;;  %v1833_v62 = vpop.f32.mrb[55].mxu0 }
0x1f36   :  { %1881 = vst.msk [vmem:[%s3144_s6 + $0x20] sm:$0xff] %vm84_vm0, %v1831_v47  ;;  %v1834_v51 = vadd.f32 %v1932_v11, %v1833_v62 }
0x1f37   :  { %1884 = vst.msk [vmem:[%s3144_s6 + $0x38] sm:$0xff] %vm84_vm0, %v1842_v30 }
0x1f38   :  { %1882 = vst.msk [vmem:[%s3144_s6 + $0x28] sm:$0xff] %vm84_vm0, %v1834_v51 }
0x1f3a   :  { %v1975_v58 = vpop.f32.mrb[56].mxu0 }
0x1f3b   :  { %v1855_v60 = vadd.f32 %v1975_v58, %v1932_v11  ;;  %v1846_v26 = vpop.f32.mrb[57].mxu0 }
0x1f3c   :  { %v1847_v39 = vadd.f32 %v1932_v11, %v1846_v26  ;;  %v1976_v25 = vpop.f32.mrb[58].mxu0 }
0x1f3d   :  { %1887 = vst.msk [vmem:[%s3144_s6 + $0x50] sm:$0xff] %vm84_vm0, %v1855_v60  ;;  %v1858_v31 = vadd.f32 %v1976_v25, %v1932_v11  ;;  %v1849_v8 = vpop.f32.mrb[59].mxu0 }
0x1f3e   :  { %1885 = vst.msk [vmem:[%s3144_s6 + $0x40] sm:$0xff] %vm84_vm0, %v1847_v39  ;;  %v1850_v3 = vadd.f32 %v1932_v11, %v1849_v8 }
0x1f3f   :  { %1888 = vst.msk [vmem:[%s3144_s6 + $0x58] sm:$0xff] %vm84_vm0, %v1858_v31 }
0x1f40   :  { %1886 = vst.msk [vmem:[%s3144_s6 + $0x48] sm:$0xff] %vm84_vm0, %v1850_v3 }
0x1f42   :  { %v1979_v57 = vpop.f32.mrb[60].mxu0 }
0x1f43   :  { %v1871_v35 = vadd.f32 %v1979_v57, %v1932_v11  ;;  %v1862_v6 = vpop.f32.mrb[61].mxu0 }
0x1f44   :  { %v1863_v22 = vadd.f32 %v1932_v11, %v1862_v6  ;;  %v1980_v23 = vpop.f32.mrb[62].mxu0 }
0x1f45   :  { %1891 = vst.msk [vmem:[%s3144_s6 + $0x70] sm:$0xff] %vm84_vm0, %v1871_v35  ;;  %v1874_v24 = vadd.f32 %v1980_v23, %v1932_v11  ;;  %v1865_v50 = vpop.f32.mrb[63].mxu0 }
0x1f46   :  { %1889 = vst.msk [vmem:[%s3144_s6 + $0x60] sm:$0xff] %vm84_vm0, %v1863_v22  ;;  %v1866_v9 = vadd.f32 %v1932_v11, %v1865_v50 }
0x1f47   :  { %1892 = vst.msk [vmem:[%s3144_s6 + $0x78] sm:$0xff] %vm84_vm0, %v1874_v24 }
0x1f48   :  { %1890 = vst.msk [vmem:[%s3144_s6 + $0x68] sm:$0xff] %vm84_vm0, %v1866_v9 }

</bundles_post_ra>
